<compile_context>
chip_gen: v6e
topology: v6e:2x2x1
jax: 0.10.0
libtpu: 0.0.40
codegen_flags: <defaults>
</compile_context>

<pallas_src>
import functools

import jax
import jax.numpy as jnp
from jax.experimental import pallas as pl
from jax.experimental.pallas import tpu as pltpu

_BN_EPS = 1e-5


def _conv3x3_stats_kernel(prelude, x_ref, scale_ref, shift_ref, w_ref,
                          y_ref, stats_ref, xpad_scr):
    """One batch element: [optional fused BN+ReLU of previous stage] -> 3x3 same-conv
    (single im2col GEMM, no bias) -> raw conv output + per-channel sum / sum-of-squares.

    x_ref:     (1, H, W, Cin)      input block (prev stage's raw conv output if prelude)
    scale_ref: (1, Cin)            fused BN scale  (unused when prelude=False)
    shift_ref: (1, Cin)            fused BN shift  (unused when prelude=False)
    w_ref:     (9*Cin, Cout)       folded conv weights, tap-major (dy, dx, cin)
    y_ref:     (1, H, W, Cout)     raw conv output (pre-BN)
    stats_ref: (1, 2, Cout)        per-block [sum, sumsq] over the H*W pixels
    xpad_scr:  (1, H+2, W+2, Cin)  VMEM scratch for in-kernel zero padding
    """
    _, H, W, Cin = x_ref.shape
    Cout = y_ref.shape[-1]

    xin = x_ref[0].astype(jnp.float32)                          # (H, W, Cin)
    if prelude:
        # BatchNorm of the previous stage (precomputed per-channel affine) + ReLU,
        # fused into this conv's load: normalized activation never touches HBM.
        xin = jnp.maximum(xin * scale_ref[...] + shift_ref[...], 0.0)

    # In-kernel zero padding: zero the halo'd scratch, then write the interior.
    xpad_scr[...] = jnp.zeros_like(xpad_scr)
    xpad_scr[0, 1:H + 1, 1:W + 1, :] = xin

    # im2col: slice the 9 taps straight from the scratch Ref (short live ranges)
    # and concatenate along the contraction axis -> ONE K-dense MXU GEMM.
    taps = []
    for dy in range(3):
        for dx in range(3):
            taps.append(xpad_scr[0, dy:dy + H, dx:dx + W, :].reshape(H * W, Cin))
    patches = jnp.concatenate(taps, axis=1)                     # (H*W, 9*Cin)

    # Conv bias is intentionally omitted: train-mode BatchNorm subtracts the batch
    # mean, which cancels a per-channel constant exactly.
    acc = jnp.dot(patches, w_ref[...].astype(jnp.float32),
                  preferred_element_type=jnp.float32)           # (H*W, Cout)

    y_ref[...] = acc.reshape(1, H, W, Cout).astype(y_ref.dtype)

    # Single-traversal BN partials for this block.
    stats_ref[0, 0:1, :] = jnp.sum(acc, axis=0, keepdims=True)
    stats_ref[0, 1:2, :] = jnp.sum(acc * acc, axis=0, keepdims=True)


def _bn_relu_kernel(y_ref, scale_ref, shift_ref, o_ref):
    """Final BatchNorm (precomputed per-channel affine) + ReLU, elementwise."""
    y = y_ref[...].astype(jnp.float32)
    o_ref[...] = jnp.maximum(y * scale_ref[...] + shift_ref[...], 0.0).astype(o_ref.dtype)


def _conv_stage(x_nhwc, scale, shift, w_flat, cout, *, prelude):
    """One conv stage: grid over batch, double-buffered HBM<->VMEM via BlockSpecs."""
    N, H, W, cin = x_nhwc.shape
    kernel = functools.partial(_conv3x3_stats_kernel, prelude)
    return pl.pallas_call(
        kernel,
        out_shape=(
            jax.ShapeDtypeStruct((N, H, W, cout), jnp.float32),   # raw conv output
            jax.ShapeDtypeStruct((N, 2, cout), jnp.float32),      # per-block BN partials
        ),
        grid=(N,),
        in_specs=[
            pl.BlockSpec((1, H, W, cin), lambda b: (b, 0, 0, 0)),
            pl.BlockSpec((1, cin), lambda b: (0, 0)),
            pl.BlockSpec((1, cin), lambda b: (0, 0)),
            pl.BlockSpec((9 * cin, cout), lambda b: (0, 0)),
        ],
        out_specs=(
            pl.BlockSpec((1, H, W, cout), lambda b: (b, 0, 0, 0)),
            pl.BlockSpec((1, 2, cout), lambda b: (b, 0, 0)),
        ),
        scratch_shapes=[pltpu.VMEM((1, H + 2, W + 2, cin), jnp.float32)],
        compiler_params=pltpu.CompilerParams(
            dimension_semantics=("parallel",),      # shards batch across v7x's 2 TCs
            vmem_limit_bytes=32 * 1024 * 1024,      # explicit; within v7x's 64 MiB
        ),
    )(x_nhwc, scale, shift, w_flat)


def _bn_relu(y, scale, shift):
    N, H, W, C = y.shape
    return pl.pallas_call(
        _bn_relu_kernel,
        out_shape=jax.ShapeDtypeStruct((N, H, W, C), jnp.float32),
        grid=(N,),
        in_specs=[
            pl.BlockSpec((1, H, W, C), lambda b: (b, 0, 0, 0)),
            pl.BlockSpec((1, C), lambda b: (0, 0)),
            pl.BlockSpec((1, C), lambda b: (0, 0)),
        ],
        out_specs=pl.BlockSpec((1, H, W, C), lambda b: (b, 0, 0, 0)),
        compiler_params=pltpu.CompilerParams(
            dimension_semantics=("parallel",),
            vmem_limit_bytes=32 * 1024 * 1024,
        ),
    )(y, scale, shift)


def _finalize_stats(stats, gamma, beta, count):
    """Reduce per-block [sum, sumsq] partials to the fused BN affine (scale, shift).

    Tiny (Cout,)-sized plain-JAX op between pallas_calls: global train-mode BN
    statistics need a sync point across the whole batch grid.
    """
    s = jnp.sum(stats[:, 0, :], axis=0)
    ss = jnp.sum(stats[:, 1, :], axis=0)
    mean = s / count
    var = jnp.maximum(ss / count - mean * mean, 0.0)   # biased var = PyTorch train mode
    scale = gamma * jax.lax.rsqrt(var + _BN_EPS)
    shift = beta - mean * scale
    return scale.reshape(1, -1), shift.reshape(1, -1)


def double_conv_forward(x_nchw, params):
    """Forward of DoubleConv. Input/output in PyTorch NCHW convention."""
    N, Cin, H, W = x_nchw.shape
    Cout = params["w1"].shape[-1]
    x = jnp.transpose(x_nchw, (0, 2, 3, 1))          # NCHW -> NHWC (boundary only)

    # Fold (3,3,Cin,Cout) HWIO weights to tap-major (9*Cin, Cout) for the im2col GEMM.
    w1 = params["w1"].reshape(9 * Cin, Cout)
    w2 = params["w2"].reshape(9 * Cout, Cout)

    ident_scale = jnp.ones((1, Cin), jnp.float32)
    ident_shift = jnp.zeros((1, Cin), jnp.float32)

    # Stage 1: conv1 (bias folded away by BN) + partial batch stats.
    y1, st1 = _conv_stage(x, ident_scale, ident_shift, w1, Cout, prelude=False)
    sc1, sh1 = _finalize_stats(st1, params["g1"], params["be1"], N * H * W)

    # Stage 2: BN1 + ReLU fused into conv2's load, + partial batch stats.
    y2, st2 = _conv_stage(y1, sc1, sh1, w2, Cout, prelude=True)
    sc2, sh2 = _finalize_stats(st2, params["g2"], params["be2"], N * H * W)

    # Stage 3: BN2 + ReLU.
    out = _bn_relu(y2, sc2, sh2)
    return jnp.transpose(out, (0, 3, 1, 2))          # NHWC -> NCHW


def init_double_conv_params(key, in_channels, out_channels):
    """Deterministic synthetic params matching the PyTorch module's shapes.

    Conv biases b1/b2 are kept (used by the pure-JAX reference) but the kernels drop
    them, since train-mode BatchNorm cancels a pre-BN per-channel bias exactly.
    """
    ks = jax.random.split(key, 8)

    def conv_w(k, cin, cout):
        fan_in = cin * 9
        bound = 1.0 / jnp.sqrt(fan_in)
        return jax.random.uniform(k, (3, 3, cin, cout), jnp.float32, -bound, bound)

    return {
        "w1": conv_w(ks[0], in_channels, out_channels),
        "b1": jax.random.uniform(ks[1], (out_channels,), jnp.float32, -0.1, 0.1),
        "g1": 1.0 + 0.1 * jax.random.normal(ks[2], (out_channels,), jnp.float32),
        "be1": 0.1 * jax.random.normal(ks[3], (out_channels,), jnp.float32),
        "w2": conv_w(ks[4], out_channels, out_channels),
        "b2": jax.random.uniform(ks[5], (out_channels,), jnp.float32, -0.1, 0.1),
        "g2": 1.0 + 0.1 * jax.random.normal(ks[6], (out_channels,), jnp.float32),
        "be2": 0.1 * jax.random.normal(ks[7], (out_channels,), jnp.float32),
    }


# Pure-JAX reference (with conv bias, two-pass BN stats) for correctness checking.
def _ref_stage(x_nhwc, w, b, g, be):
    y = jax.lax.conv_general_dilated(
        x_nhwc, w, window_strides=(1, 1), padding="SAME",
        dimension_numbers=("NHWC", "HWIO", "NHWC"))
    y = y + b[None, None, None, :]
    mean = jnp.mean(y, axis=(0, 1, 2), keepdims=True)
    var = jnp.mean((y - mean) ** 2, axis=(0, 1, 2), keepdims=True)
    y = (y - mean) * jax.lax.rsqrt(var + _BN_EPS) * g[None, None, None, :] + be[None, None, None, :]
    return jnp.maximum(y, 0.0)


def double_conv_ref(x_nchw, params):
    x = jnp.transpose(x_nchw, (0, 2, 3, 1))
    y = _ref_stage(x, params["w1"], params["b1"], params["g1"], params["be1"])
    y = _ref_stage(y, params["w2"], params["b2"], params["g2"], params["be2"])
    return jnp.transpose(y, (0, 3, 1, 2))


if __name__ == "__main__":
    key = jax.random.PRNGKey(0)
    k_x, k_p = jax.random.split(key)

    N, Cin, H, W = 2, 4, 16, 16
    Cout = 8
    x = jax.random.normal(k_x, (N, Cin, H, W), jnp.float32)
    params = init_double_conv_params(k_p, Cin, Cout)

    out = jax.block_until_ready(double_conv_forward(x, params))
    ref = jax.block_until_ready(double_conv_ref(x, params))

    assert out.shape == (N, Cout, H, W)
    assert jnp.allclose(out, ref, rtol=1e-3, atol=1e-3), float(jnp.max(jnp.abs(out - ref)))

    print("KERNEL_OK")
</pallas_src>

<mosaic_0001>
module attributes {stable_mosaic.version = 11 : i64} {
  func.func @_conv3x3_stats_kernel(%arg0: i32, %arg1: memref<1x16x16x4xf32, #tpu.memory_space<vmem>>, %arg2: memref<1x4xf32, #tpu.memory_space<vmem>>, %arg3: memref<1x4xf32, #tpu.memory_space<vmem>>, %arg4: memref<36x8xf32, #tpu.memory_space<vmem>>, %arg5: memref<1x16x16x8xf32, #tpu.memory_space<vmem>>, %arg6: memref<1x2x8xf32, #tpu.memory_space<vmem>>, %arg7: memref<1x18x18x4xf32, #tpu.memory_space<vmem>>) attributes {dimension_semantics = [#tpu.dimension_semantics<parallel>], iteration_bounds = array<i64: 2>, scalar_prefetch = 0 : i64, scratch_operands = 1 : i64, tpu.core_type = #tpu.core_type<tc>, window_params = [{transform_indices = @transform_0, window_bounds = array<i64: 1, 16, 16, 4>}, {pipeline_mode = #tpu.pipeline_mode<synchronous>, transform_indices = @transform_1, window_bounds = array<i64: 1, 4>}, {pipeline_mode = #tpu.pipeline_mode<synchronous>, transform_indices = @transform_2, window_bounds = array<i64: 1, 4>}, {pipeline_mode = #tpu.pipeline_mode<synchronous>, transform_indices = @transform_3, window_bounds = array<i64: 36, 8>}, {transform_indices = @transform_4, window_bounds = array<i64: 1, 16, 16, 8>}, {transform_indices = @transform_5, window_bounds = array<i64: 1, 2, 8>}]} {
    %c0 = arith.constant 0 : index
    %c0_0 = arith.constant 0 : index
    %c0_1 = arith.constant 0 : index
    %c0_2 = arith.constant 0 : index
    %0 = vector.load %arg1[%c0, %c0_0, %c0_1, %c0_2] : memref<1x16x16x4xf32, #tpu.memory_space<vmem>>, vector<1x16x16x4xf32>
    %1 = vector.shape_cast %0 : vector<1x16x16x4xf32> to vector<16x16x4xf32>
    %cst = arith.constant 0.000000e+00 : f32
    %2 = vector.broadcast %cst : f32 to vector<1x18x18x4xf32>
    %c0_3 = arith.constant 0 : index
    %c0_4 = arith.constant 0 : index
    %c0_5 = arith.constant 0 : index
    %c0_6 = arith.constant 0 : index
    %3 = vector.load %arg7[%c0_3, %c0_4, %c0_5, %c0_6] : memref<1x18x18x4xf32, #tpu.memory_space<vmem>>, vector<1x18x18x4xf32>
    tpu.vector_store %arg7[%c0_3, %c0_4, %c0_5, %c0_6], %2 {strides = array<i32>} : memref<1x18x18x4xf32, #tpu.memory_space<vmem>>, vector<1x18x18x4xf32>,
    %c0_7 = arith.constant 0 : index
    %c1 = arith.constant 1 : index
    %c1_8 = arith.constant 1 : index
    %c0_9 = arith.constant 0 : index
    %4 = vector.load %arg7[%c0_7, %c1, %c1_8, %c0_9] : memref<1x18x18x4xf32, #tpu.memory_space<vmem>>, vector<1x16x16x4xf32>
    %5 = vector.shape_cast %4 : vector<1x16x16x4xf32> to vector<16x16x4xf32>
    %6 = vector.shape_cast %1 : vector<16x16x4xf32> to vector<1x16x16x4xf32>
    tpu.vector_store %arg7[%c0_7, %c1, %c1_8, %c0_9], %6 {strides = array<i32>} : memref<1x18x18x4xf32, #tpu.memory_space<vmem>>, vector<1x16x16x4xf32>,
    %c0_10 = arith.constant 0 : index
    %c0_11 = arith.constant 0 : index
    %c0_12 = arith.constant 0 : index
    %c0_13 = arith.constant 0 : index
    %7 = vector.load %arg7[%c0_10, %c0_11, %c0_12, %c0_13] : memref<1x18x18x4xf32, #tpu.memory_space<vmem>>, vector<1x16x16x4xf32>
    %8 = vector.shape_cast %7 : vector<1x16x16x4xf32> to vector<16x16x4xf32>
    %9 = vector.shape_cast %8 : vector<16x16x4xf32> to vector<256x4xf32>
    %c0_14 = arith.constant 0 : index
    %c0_15 = arith.constant 0 : index
    %c1_16 = arith.constant 1 : index
    %c0_17 = arith.constant 0 : index
    %10 = vector.load %arg7[%c0_14, %c0_15, %c1_16, %c0_17] : memref<1x18x18x4xf32, #tpu.memory_space<vmem>>, vector<1x16x16x4xf32>
    %11 = vector.shape_cast %10 : vector<1x16x16x4xf32> to vector<16x16x4xf32>
    %12 = vector.shape_cast %11 : vector<16x16x4xf32> to vector<256x4xf32>
    %c0_18 = arith.constant 0 : index
    %c0_19 = arith.constant 0 : index
    %c2 = arith.constant 2 : index
    %c0_20 = arith.constant 0 : index
    %13 = vector.load %arg7[%c0_18, %c0_19, %c2, %c0_20] : memref<1x18x18x4xf32, #tpu.memory_space<vmem>>, vector<1x16x16x4xf32>
    %14 = vector.shape_cast %13 : vector<1x16x16x4xf32> to vector<16x16x4xf32>
    %15 = vector.shape_cast %14 : vector<16x16x4xf32> to vector<256x4xf32>
    %c0_21 = arith.constant 0 : index
    %c1_22 = arith.constant 1 : index
    %c0_23 = arith.constant 0 : index
    %c0_24 = arith.constant 0 : index
    %16 = vector.load %arg7[%c0_21, %c1_22, %c0_23, %c0_24] : memref<1x18x18x4xf32, #tpu.memory_space<vmem>>, vector<1x16x16x4xf32>
    %17 = vector.shape_cast %16 : vector<1x16x16x4xf32> to vector<16x16x4xf32>
    %18 = vector.shape_cast %17 : vector<16x16x4xf32> to vector<256x4xf32>
    %c0_25 = arith.constant 0 : index
    %c1_26 = arith.constant 1 : index
    %c1_27 = arith.constant 1 : index
    %c0_28 = arith.constant 0 : index
    %19 = vector.load %arg7[%c0_25, %c1_26, %c1_27, %c0_28] : memref<1x18x18x4xf32, #tpu.memory_space<vmem>>, vector<1x16x16x4xf32>
    %20 = vector.shape_cast %19 : vector<1x16x16x4xf32> to vector<16x16x4xf32>
    %21 = vector.shape_cast %20 : vector<16x16x4xf32> to vector<256x4xf32>
    %c0_29 = arith.constant 0 : index
    %c1_30 = arith.constant 1 : index
    %c2_31 = arith.constant 2 : index
    %c0_32 = arith.constant 0 : index
    %22 = vector.load %arg7[%c0_29, %c1_30, %c2_31, %c0_32] : memref<1x18x18x4xf32, #tpu.memory_space<vmem>>, vector<1x16x16x4xf32>
    %23 = vector.shape_cast %22 : vector<1x16x16x4xf32> to vector<16x16x4xf32>
    %24 = vector.shape_cast %23 : vector<16x16x4xf32> to vector<256x4xf32>
    %c0_33 = arith.constant 0 : index
    %c2_34 = arith.constant 2 : index
    %c0_35 = arith.constant 0 : index
    %c0_36 = arith.constant 0 : index
    %25 = vector.load %arg7[%c0_33, %c2_34, %c0_35, %c0_36] : memref<1x18x18x4xf32, #tpu.memory_space<vmem>>, vector<1x16x16x4xf32>
    %26 = vector.shape_cast %25 : vector<1x16x16x4xf32> to vector<16x16x4xf32>
    %27 = vector.shape_cast %26 : vector<16x16x4xf32> to vector<256x4xf32>
    %c0_37 = arith.constant 0 : index
    %c2_38 = arith.constant 2 : index
    %c1_39 = arith.constant 1 : index
    %c0_40 = arith.constant 0 : index
    %28 = vector.load %arg7[%c0_37, %c2_38, %c1_39, %c0_40] : memref<1x18x18x4xf32, #tpu.memory_space<vmem>>, vector<1x16x16x4xf32>
    %29 = vector.shape_cast %28 : vector<1x16x16x4xf32> to vector<16x16x4xf32>
    %30 = vector.shape_cast %29 : vector<16x16x4xf32> to vector<256x4xf32>
    %c0_41 = arith.constant 0 : index
    %c2_42 = arith.constant 2 : index
    %c2_43 = arith.constant 2 : index
    %c0_44 = arith.constant 0 : index
    %31 = vector.load %arg7[%c0_41, %c2_42, %c2_43, %c0_44] : memref<1x18x18x4xf32, #tpu.memory_space<vmem>>, vector<1x16x16x4xf32>
    %32 = vector.shape_cast %31 : vector<1x16x16x4xf32> to vector<16x16x4xf32>
    %33 = vector.shape_cast %32 : vector<16x16x4xf32> to vector<256x4xf32>
    %34 = tpu.concatenate %9, %12, %15, %18, %21, %24, %27, %30, %33 in 1 : vector<256x4xf32>, vector<256x4xf32>, vector<256x4xf32>, vector<256x4xf32>, vector<256x4xf32>, vector<256x4xf32>, vector<256x4xf32>, vector<256x4xf32>, vector<256x4xf32> -> vector<256x36xf32>
    %c0_45 = arith.constant 0 : index
    %c0_46 = arith.constant 0 : index
    %35 = vector.load %arg4[%c0_45, %c0_46] : memref<36x8xf32, #tpu.memory_space<vmem>>, vector<36x8xf32>
    %cst_47 = arith.constant dense<0.000000e+00> : vector<256x8xf32>
    %36 = tpu.matmul %34, %35, %cst_47 {dimension_numbers = #tpu.dot_dimension_numbers<[1], [0], [0], [1], [0, 0, 1, 1], [], []>} : vector<256x36xf32>, vector<36x8xf32>, vector<256x8xf32> -> vector<256x8xf32>
    %37 = vector.shape_cast %36 : vector<256x8xf32> to vector<1x16x16x8xf32>
    %c0_48 = arith.constant 0 : index
    %c0_49 = arith.constant 0 : index
    %c0_50 = arith.constant 0 : index
    %c0_51 = arith.constant 0 : index
    %38 = vector.load %arg5[%c0_48, %c0_49, %c0_50, %c0_51] : memref<1x16x16x8xf32, #tpu.memory_space<vmem>>, vector<1x16x16x8xf32>
    tpu.vector_store %arg5[%c0_48, %c0_49, %c0_50, %c0_51], %37 {strides = array<i32>} : memref<1x16x16x8xf32, #tpu.memory_space<vmem>>, vector<1x16x16x8xf32>,
    %cst_52 = arith.constant dense<0.000000e+00> : vector<8xf32>
    %39 = vector.multi_reduction <add>, %36, %cst_52 [0] : vector<256x8xf32> to vector<8xf32>
    %40 = vector.shape_cast %39 : vector<8xf32> to vector<1x8xf32>
    %c0_53 = arith.constant 0 : index
    %c0_54 = arith.constant 0 : index
    %c0_55 = arith.constant 0 : index
    %41 = vector.load %arg6[%c0_53, %c0_54, %c0_55] : memref<1x2x8xf32, #tpu.memory_space<vmem>>, vector<1x1x8xf32>
    %42 = vector.shape_cast %41 : vector<1x1x8xf32> to vector<1x8xf32>
    %43 = vector.shape_cast %40 : vector<1x8xf32> to vector<1x1x8xf32>
    tpu.vector_store %arg6[%c0_53, %c0_54, %c0_55], %43 {strides = array<i32>} : memref<1x2x8xf32, #tpu.memory_space<vmem>>, vector<1x1x8xf32>,
    %44 = arith.mulf %36, %36 : vector<256x8xf32>
    %cst_56 = arith.constant dense<0.000000e+00> : vector<8xf32>
    %45 = vector.multi_reduction <add>, %44, %cst_56 [0] : vector<256x8xf32> to vector<8xf32>
    %46 = vector.shape_cast %45 : vector<8xf32> to vector<1x8xf32>
    %c0_57 = arith.constant 0 : index
    %c1_58 = arith.constant 1 : index
    %c0_59 = arith.constant 0 : index
    %47 = vector.load %arg6[%c0_57, %c1_58, %c0_59] : memref<1x2x8xf32, #tpu.memory_space<vmem>>, vector<1x1x8xf32>
    %48 = vector.shape_cast %47 : vector<1x1x8xf32> to vector<1x8xf32>
    %49 = vector.shape_cast %46 : vector<1x8xf32> to vector<1x1x8xf32>
    tpu.vector_store %arg6[%c0_57, %c1_58, %c0_59], %49 {strides = array<i32>} : memref<1x2x8xf32, #tpu.memory_space<vmem>>, vector<1x1x8xf32>,
    return
  }
  func.func @transform_0(%arg0: i32) -> (i32, i32, i32, i32) {
    %c0_i32 = arith.constant 0 : i32
    %c0_i32_0 = arith.constant 0 : i32
    %c0_i32_1 = arith.constant 0 : i32
    %c0_i32_2 = arith.constant 0 : i32
    return %arg0, %c0_i32, %c0_i32_0, %c0_i32_1 : i32, i32, i32, i32
  }
  func.func @transform_1(%arg0: i32) -> (i32, i32) {
    %c0_i32 = arith.constant 0 : i32
    %c0_i32_0 = arith.constant 0 : i32
    %c0_i32_1 = arith.constant 0 : i32
    return %c0_i32, %c0_i32_0 : i32, i32
  }
  func.func @transform_2(%arg0: i32) -> (i32, i32) {
    %c0_i32 = arith.constant 0 : i32
    %c0_i32_0 = arith.constant 0 : i32
    %c0_i32_1 = arith.constant 0 : i32
    return %c0_i32, %c0_i32_0 : i32, i32
  }
  func.func @transform_3(%arg0: i32) -> (i32, i32) {
    %c0_i32 = arith.constant 0 : i32
    %c0_i32_0 = arith.constant 0 : i32
    %c0_i32_1 = arith.constant 0 : i32
    return %c0_i32, %c0_i32_0 : i32, i32
  }
  func.func @transform_4(%arg0: i32) -> (i32, i32, i32, i32) {
    %c0_i32 = arith.constant 0 : i32
    %c0_i32_0 = arith.constant 0 : i32
    %c0_i32_1 = arith.constant 0 : i32
    %c0_i32_2 = arith.constant 0 : i32
    return %arg0, %c0_i32, %c0_i32_0, %c0_i32_1 : i32, i32, i32, i32
  }
  func.func @transform_5(%arg0: i32) -> (i32, i32, i32) {
    %c0_i32 = arith.constant 0 : i32
    %c0_i32_0 = arith.constant 0 : i32
    %c0_i32_1 = arith.constant 0 : i32
    return %arg0, %c0_i32, %c0_i32_0 : i32, i32, i32
  }
}

</mosaic_0001>

<bundles_post_ra>
// kernel: tpu_custom_call.1
= control target key start
LH: loop header
LB: loop body
LE: loop exit
PB: predicated region body
PF: predicated region fallthrough
CT: control target
= control target key end

     0   :  { %11 = vsyncpa [#allocation4], 0  ;;  %s4326_s0 = inlined_call_operand.vmem [shape: f32[2,16,16,4], index: 0, kind: input, shape index: {}]   ;;  %s4327_s1 = inlined_call_operand.vmem [shape: f32[1,4], index: 1, kind: input, shape index: {}]   ;;  %s4328_s2 = inlined_call_operand.vmem [shape: f32[1,4], index: 2, kind: input, shape index: {}]   ;;  %s4329_s3 = inlined_call_operand.vmem [shape: f32[36,8], index: 3, kind: input, shape index: {}]   ;;  %s4330_s4 = inlined_call_operand.vmem [shape: f32[2,16,16,8], index: 4, kind: output, shape index: {0}]   ;;  %s4331_s5 = inlined_call_operand.hbm [shape: f32[2,2,8], index: 5, kind: output, shape index: {1}]  }
   0x1   :  { %13 = vsyncpa [#allocation4 + $0x1], 0  ;;  %s2887_s18 = smov 0   ;;  %s2889_s19 = smov 0  }
   0x2   :  { %s2891_s20 = smov 0   ;;  %s2893_s1 = smov 0  }
   0x3 LB: > { %s2908_s2 = sadd.s32 4294967295, %s2845_s1   ;;  %s2575_s21 = sadd.s32 4294967294, %s2845_s1   ;;  %s2845_s1 = sphi %s2893_s1, %s4466_s1   ;;  %s2841_s20 = sphi %s2891_s20, %s4465_s20   ;;  %s2837_s19 = sphi %s2889_s19, %s4464_s19   ;;  %s2833_s18 = sphi %s2887_s18, %s4463_s18  }
   0x4   : > { %s2912_s22 = sadd.s32 1, %s2845_s1   ;;  %s141_s23 = sadd.s32 1, %s2841_s20 }
   0x5   : > { %s138_s24 = ssub.s32 %s2845_s1, %s2912_s22  ;;  %p151_p0 = scmp.ne.s32.totalorder %s2841_s20, %s2837_s19 }
   0x6   : > { %p139_p1 = scmp.eq.s32.totalorder %s138_s24, 0  ;;  %p152_p2 = scmp.eq.s32.totalorder %s2908_s2, 1 }
   0x7   : > { %p157_p3 = scmp.ne.s32.totalorder %s2837_s19, %s2833_s18  ;;  %p158_p4 = scmp.eq.s32.totalorder %s2575_s21, 1 }
   0x8   : > { %s2923_s25 = scalar_select %p139_p1, %s2841_s20, %s141_s23  }
   0x9   : > { %p2925_p5 = por %p152_p2, %p151_p0  ;;  %p2929_p6 = por %p158_p4, %p157_p3 }
   0xa   : > { %p2578_p7 = scmp.ge.s32.totalorder %s2845_s1, 1  ;;  %p193_p8 = scmp.lt.s32.totalorder %s2845_s1, 3 }
   0xc   : > { %p194_p9 = pnand %p2578_p7, %p193_p8 }
   0xe   : > { %197 = sbr.rel (%p194_p9) target bundleno = 906 (0x38a), region = 36 }
  0x13   : > { %vm268_vm0 = vcmask 31744   ;;  %vm271_vm1 = vcmask 25600   ;;  %p226_p10 = scmp.lt.s32.totalorder %s2908_s2, 1  ;;  %v2847_v0 = vmov 0.0   ;;  %s2848_s8 = smov 4   ;;  %vm2035_vm2 = vcmask 1043456  }
  0x14   : > { %269 = vst.msk [vmem:[#allocation2] sm:$0xff] %vm268_vm0, %v2847_v0  ;;  %270 = vst.msk [vmem:[#allocation2 + $0x8] sm:$0xff] %vm268_vm0, %v2847_v0  ;;  %s2849_s9 = smov 8   ;;  %s2850_s10 = smov 12   ;;  %vm1702_vm3 = vcmask 64512   ;;  %vm1735_vm4 = vcmask 97280  }
  0x15   : > { %273 = vst.msk [vmem:[#allocation2 + $0x18] sm:$0xff] %vm268_vm0, %v2847_v0  ;;  %274 = vst.msk [vmem:[#allocation2 + $0x20] sm:$0xff] %vm268_vm0, %v2847_v0  ;;  %s2993_s28 = scalar_select %p226_p10, %s2908_s2, 1  ;;  %vm1768_vm5 = vcmask 130048   ;;  %vm1801_vm6 = vcmask 162816   ;;  %vm1867_vm7 = vcmask 228352  }
  0x16   : > { %276 = vst.msk [vmem:[#allocation2 + $0x30] sm:$0xff] %vm268_vm0, %v2847_v0  ;;  %277 = vst.msk [vmem:[#allocation2 + $0x38] sm:$0xff] %vm268_vm0, %v2847_v0  ;;  %s2851_s11 = smov 16   ;;  %s2852_s14 = smov 20   ;;  %vm1834_vm8 = vcmask 195584   ;;  %vm1900_vm9 = vcmask 261120  }
  0x17   : > { %279 = vst.msk [vmem:[#allocation2 + $0x48] sm:$0xff] %vm268_vm0, %v2847_v0  ;;  %280 = vst.msk [vmem:[#allocation2 + $0x50] sm:$0xff] %vm268_vm0, %v2847_v0  ;;  %s2621_s29 = sshll.u32 %s2993_s28, 8  ;;  %s2853_s23 = smov 24   ;;  %vm1938_vm10 = vcmask 293888   ;;  %vm2365_vm11 = vcmask 57344  }
  0x18   : > { %282 = vst.msk [vmem:[#allocation2 + $0x60] sm:$0xff] %vm268_vm0, %v2847_v0  ;;  %283 = vst.msk [vmem:[#allocation2 + $0x68] sm:$0xff] %vm268_vm0, %v2847_v0  ;;  %s3001_s7 = scalar_lea.vmem %s4326_s0, %s2621_s29  ;;  %s2855_s12 = smov 32  }
  0x19   : > { %285 = vst.msk [vmem:[#allocation2 + $0x78] sm:$0xff] %vm268_vm0, %v2847_v0  ;;  %286 = vst.msk [vmem:[#allocation2 + $0x80] sm:$0xff] %vm268_vm0, %v2847_v0  ;;  %v236_v1 = vld [vmem:[%s3001_s7] sm:$0xff]  ;;  %v238_v2 = vld [vmem:[%s3001_s7 + $0x10] sm:$0xff]  ;;  %s223_s28 = sand.u32 1, %s2837_s19   ;;  %s2618_s13 = sshll.u32 %s2908_s2, 5 }
  0x1a   : > { %288 = vst.msk [vmem:[#allocation2 + $0x90] sm:$0xff] %vm268_vm0, %v2847_v0  ;;  %289 = vst.msk [vmem:[#allocation2 + $0x98] sm:$0xff] %vm268_vm0, %v2847_v0  ;;  %v237_v3 = vld [vmem:[%s3001_s7 + $0x8] sm:$0xff]  ;;  %v240_v4 = vld [vmem:[%s3001_s7 + $0x20] sm:$0xff]  ;;  %s2489_s21 = scalar_lea.hbm %s4331_s5, %s2618_s13  ;;  %s2856_s30 = smov [#allocation3]  }
  0x1b   : > { %291 = vst.msk [vmem:[#allocation2 + $0xa8] sm:$0xff] %vm268_vm0, %v2847_v0  ;;  %292 = vst.msk [vmem:[#allocation2 + $0xb0] sm:$0xff] %vm268_vm0, %v2847_v0  ;;  %v239_v5 = vld [vmem:[%s3001_s7 + $0x18] sm:$0xff]  ;;  %v242_v6 = vld [vmem:[%s3001_s7 + $0x30] sm:$0xff]  ;;  %s2789_s2 = sshll.u32 %s2856_s30, 4  ;;  %s2790_s2 = int_to_ptr.vmem [resolvable:$false] %s2789_s2 }
  0x1c   : > { %294 = vst.msk [vmem:[#allocation2 + $0xc0] sm:$0xff] %vm268_vm0, %v2847_v0  ;;  %295 = vst.msk [vmem:[#allocation2 + $0xc8] sm:$0xff] %vm268_vm0, %v2847_v0  ;;  %v389_v7 = vld [vmem:[#allocation2 + $0x1] sm:$0xff]  ;;  %v243_v11 = vld [vmem:[%s3001_s7 + $0x38] sm:$0xff]  ;;  %s2791_s6 = scalar_lea.vmem %s2790_s2, 64 }
  0x1d   : > { %297 = vst.msk [vmem:[#allocation2 + $0xd8] sm:$0xff] %vm268_vm0, %v2847_v0  ;;  %298 = vst.msk [vmem:[#allocation2 + $0xe0] sm:$0xff] %vm268_vm0, %v2847_v0  ;;  %v241_v9 = vld [vmem:[%s3001_s7 + $0x28] sm:$0xff]  ;;  %678 = vrot.lane.b32.xlu0 %v389_v7, %s2848_s8  ;;  %v244_v10 = vld [vmem:[%s3001_s7 + $0x40] sm:$0xff] }
  0x1e   : > { %300 = vst.msk [vmem:[#allocation2 + $0xf0] sm:$0xff] %vm268_vm0, %v2847_v0  ;;  %301 = vst.msk [vmem:[#allocation2 + $0xf8] sm:$0xff] %vm268_vm0, %v2847_v0  ;;  %v246_v12 = vld [vmem:[%s3001_s7 + $0x50] sm:$0xff]  ;;  %v245_v13 = vld [vmem:[%s3001_s7 + $0x48] sm:$0xff] }
  0x1f   : > { %303 = vst.msk [vmem:[#allocation2 + $0x108] sm:$0xff] %vm268_vm0, %v2847_v0  ;;  %304 = vst.msk [vmem:[#allocation2 + $0x110] sm:$0xff] %vm268_vm0, %v2847_v0  ;;  %v248_v14 = vld [vmem:[%s3001_s7 + $0x60] sm:$0xff]  ;;  %v247_v15 = vld [vmem:[%s3001_s7 + $0x58] sm:$0xff] }
  0x20   : > { %306 = vst.msk [vmem:[#allocation2 + $0x120] sm:$0xff] %vm268_vm0, %v2847_v0  ;;  %307 = vst.msk [vmem:[#allocation2 + $0x128] sm:$0xff] %vm268_vm0, %v2847_v0  ;;  %v250_v16 = vld [vmem:[%s3001_s7 + $0x70] sm:$0xff]  ;;  %v249_v17 = vld [vmem:[%s3001_s7 + $0x68] sm:$0xff] }
  0x21   : > { %309 = vst.msk [vmem:[#allocation2 + $0x138] sm:$0xff] %vm268_vm0, %v2847_v0  ;;  %310 = vst.msk [vmem:[#allocation2 + $0x140] sm:$0xff] %vm268_vm0, %v2847_v0  ;;  %v252_v18 = vld [vmem:[%s3001_s7 + $0x80] sm:$0xff]  ;;  %v251_v19 = vld [vmem:[%s3001_s7 + $0x78] sm:$0xff] }
  0x22   : > { %312 = vst.msk [vmem:[#allocation2 + $0x150] sm:$0xff] %vm268_vm0, %v2847_v0  ;;  %313 = vst.msk [vmem:[#allocation2 + $0x158] sm:$0xff] %vm268_vm0, %v2847_v0  ;;  %v254_v20 = vld [vmem:[%s3001_s7 + $0x90] sm:$0xff]  ;;  %v253_v21 = vld [vmem:[%s3001_s7 + $0x88] sm:$0xff] }
  0x23   : > { %315 = vst.msk [vmem:[#allocation2 + $0x168] sm:$0xff] %vm268_vm0, %v2847_v0  ;;  %316 = vst.msk [vmem:[#allocation2 + $0x170] sm:$0xff] %vm268_vm0, %v2847_v0  ;;  %v256_v22 = vld [vmem:[%s3001_s7 + $0xa0] sm:$0xff]  ;;  %v255_v23 = vld [vmem:[%s3001_s7 + $0x98] sm:$0xff] }
  0x24   : > { %318 = vst.msk [vmem:[#allocation2 + $0x180] sm:$0xff] %vm268_vm0, %v2847_v0  ;;  %319 = vst.msk [vmem:[#allocation2 + $0x188] sm:$0xff] %vm268_vm0, %v2847_v0  ;;  %v258_v24 = vld [vmem:[%s3001_s7 + $0xb0] sm:$0xff]  ;;  %v257_v28 = vld [vmem:[%s3001_s7 + $0xa8] sm:$0xff] }
  0x25   : > { %321 = vst.msk [vmem:[#allocation2 + $0x198] sm:$0xff] %vm268_vm0, %v2847_v0  ;;  %322 = vst.msk [vmem:[#allocation2 + $0x1a0] sm:$0xff] %vm268_vm0, %v2847_v0  ;;  %v260_v29 = vld [vmem:[%s3001_s7 + $0xc0] sm:$0xff]  ;;  %v259_v33 = vld [vmem:[%s3001_s7 + $0xb8] sm:$0xff] }
  0x26   : > { %272 = vst.msk [vmem:[#allocation2 + $0x10] sm:$0x3] %vm271_vm1, %v2847_v0  ;;  %275 = vst.msk [vmem:[#allocation2 + $0x28] sm:$0x3] %vm271_vm1, %v2847_v0  ;;  %v262_v34 = vld [vmem:[%s3001_s7 + $0xd0] sm:$0xff]  ;;  %v261_v35 = vld [vmem:[%s3001_s7 + $0xc8] sm:$0xff] }
  0x27   : > { %278 = vst.msk [vmem:[#allocation2 + $0x40] sm:$0x3] %vm271_vm1, %v2847_v0  ;;  %281 = vst.msk [vmem:[#allocation2 + $0x58] sm:$0x3] %vm271_vm1, %v2847_v0  ;;  %v264_v36 = vld [vmem:[%s3001_s7 + $0xe0] sm:$0xff]  ;;  %v263_v37 = vld [vmem:[%s3001_s7 + $0xd8] sm:$0xff] }
  0x28   : > { %284 = vst.msk [vmem:[#allocation2 + $0x70] sm:$0x3] %vm271_vm1, %v2847_v0  ;;  %287 = vst.msk [vmem:[#allocation2 + $0x88] sm:$0x3] %vm271_vm1, %v2847_v0  ;;  %v265_v39 = vld [vmem:[%s3001_s7 + $0xe8] sm:$0xff] }
  0x29   : > { %290 = vst.msk [vmem:[#allocation2 + $0xa0] sm:$0x3] %vm271_vm1, %v2847_v0  ;;  %293 = vst.msk [vmem:[#allocation2 + $0xb8] sm:$0x3] %vm271_vm1, %v2847_v0  ;;  %v421_v62 = vld [vmem:[#allocation2 + $0x2] sm:$0xff] }
  0x2a   : > { %296 = vst.msk [vmem:[#allocation2 + $0xd0] sm:$0x3] %vm271_vm1, %v2847_v0  ;;  %299 = vst.msk [vmem:[#allocation2 + $0xe8] sm:$0x3] %vm271_vm1, %v2847_v0 }
  0x2b   : > { %302 = vst.msk [vmem:[#allocation2 + $0x100] sm:$0x3] %vm271_vm1, %v2847_v0  ;;  %305 = vst.msk [vmem:[#allocation2 + $0x118] sm:$0x3] %vm271_vm1, %v2847_v0 }
  0x2c   : > { %308 = vst.msk [vmem:[#allocation2 + $0x130] sm:$0x3] %vm271_vm1, %v2847_v0  ;;  %311 = vst.msk [vmem:[#allocation2 + $0x148] sm:$0x3] %vm271_vm1, %v2847_v0 }
  0x2d   : > { %314 = vst.msk [vmem:[#allocation2 + $0x160] sm:$0x3] %vm271_vm1, %v2847_v0  ;;  %317 = vst.msk [vmem:[#allocation2 + $0x178] sm:$0x3] %vm271_vm1, %v2847_v0  ;;  %v390_v8 = vld [vmem:[#allocation2 + $0x9] sm:$0xff] }
  0x2e   : > { %320 = vst.msk [vmem:[#allocation2 + $0x190] sm:$0x3] %vm271_vm1, %v2847_v0  ;;  %323 = vst.msk [vmem:[#allocation2 + $0x1a8] sm:$0x3] %vm271_vm1, %v2847_v0  ;;  %680 = vrot.lane.b32.xlu0 %v390_v8, %s2848_s8 }
  0x2f   : > { %325 = vst.msk [vmem:[#allocation2 + $0x19] sm:$0xff] %vm268_vm0, %v236_v1  ;;  %327 = vst.msk [vmem:[#allocation2 + $0x31] sm:$0xff] %vm268_vm0, %v238_v2  ;;  %v422_v1 = vld [vmem:[#allocation2 + $0xa] sm:$0xff] }
  0x30   : > { %326 = vst.msk [vmem:[#allocation2 + $0x21] sm:$0xff] %vm268_vm0, %v237_v3  ;;  %329 = vst.msk [vmem:[#allocation2 + $0x49] sm:$0xff] %vm268_vm0, %v240_v4 }
  0x31   : > { %328 = vst.msk [vmem:[#allocation2 + $0x39] sm:$0xff] %vm268_vm0, %v239_v5  ;;  %331 = vst.msk [vmem:[#allocation2 + $0x61] sm:$0xff] %vm268_vm0, %v242_v6 }
  0x32   : > { %330 = vst.msk [vmem:[#allocation2 + $0x51] sm:$0xff] %vm268_vm0, %v241_v9  ;;  %333 = vst.msk [vmem:[#allocation2 + $0x79] sm:$0xff] %vm268_vm0, %v244_v10 }
  0x33   : > { %332 = vst.msk [vmem:[#allocation2 + $0x69] sm:$0xff] %vm268_vm0, %v243_v11  ;;  %335 = vst.msk [vmem:[#allocation2 + $0x91] sm:$0xff] %vm268_vm0, %v246_v12 }
  0x34   : > { %334 = vst.msk [vmem:[#allocation2 + $0x81] sm:$0xff] %vm268_vm0, %v245_v13  ;;  %337 = vst.msk [vmem:[#allocation2 + $0xa9] sm:$0xff] %vm268_vm0, %v248_v14 }
  0x35   : > { %336 = vst.msk [vmem:[#allocation2 + $0x99] sm:$0xff] %vm268_vm0, %v247_v15  ;;  %339 = vst.msk [vmem:[#allocation2 + $0xc1] sm:$0xff] %vm268_vm0, %v250_v16 }
  0x36   : > { %338 = vst.msk [vmem:[#allocation2 + $0xb1] sm:$0xff] %vm268_vm0, %v249_v17  ;;  %341 = vst.msk [vmem:[#allocation2 + $0xd9] sm:$0xff] %vm268_vm0, %v252_v18  ;;  %v3046_v25 = vld [vmem:[#allocation2 + $0x19] sm:$0xff]  ;;  %v3048_v26 = vld [vmem:[#allocation2 + $0x31] sm:$0xff] }
  0x37   : > { %340 = vst.msk [vmem:[#allocation2 + $0xc9] sm:$0xff] %vm268_vm0, %v251_v19  ;;  %343 = vst.msk [vmem:[#allocation2 + $0xf1] sm:$0xff] %vm268_vm0, %v254_v20  ;;  %682 = vrot.lane.b32.xlu1 %v3046_v25, %s2848_s8  ;;  %v3055_v27 = vld [vmem:[#allocation2 + $0x21] sm:$0xff]  ;;  %686 = vrot.lane.b32.xlu0 %v3048_v26, %s2848_s8  ;;  %v3063_v30 = vld [vmem:[#allocation2 + $0x49] sm:$0xff] }
  0x38   : > { %342 = vst.msk [vmem:[#allocation2 + $0xe1] sm:$0xff] %vm268_vm0, %v253_v21  ;;  %345 = vst.msk [vmem:[#allocation2 + $0x109] sm:$0xff] %vm268_vm0, %v256_v22  ;;  %v3067_v31 = vld [vmem:[#allocation2 + $0x39] sm:$0xff]  ;;  %v3071_v32 = vld [vmem:[#allocation2 + $0x61] sm:$0xff] }
  0x39   : > { %344 = vst.msk [vmem:[#allocation2 + $0xf9] sm:$0xff] %vm268_vm0, %v255_v23  ;;  %347 = vst.msk [vmem:[#allocation2 + $0x121] sm:$0xff] %vm268_vm0, %v258_v24  ;;  %v3083_v38 = vld [vmem:[#allocation2 + $0x51] sm:$0xff]  ;;  %v3091_v40 = vld [vmem:[#allocation2 + $0x79] sm:$0xff] }
  0x3a   : > { %346 = vst.msk [vmem:[#allocation2 + $0x111] sm:$0xff] %vm268_vm0, %v257_v28  ;;  %349 = vst.msk [vmem:[#allocation2 + $0x139] sm:$0xff] %vm268_vm0, %v260_v29  ;;  %v3095_v41 = vld [vmem:[#allocation2 + $0x69] sm:$0xff]  ;;  %v3099_v42 = vld [vmem:[#allocation2 + $0x91] sm:$0xff] }
  0x3b   : > { %684 = vrot.lane.b32.xlu1 %v3055_v27, %s2848_s8  ;;  %690 = vrot.lane.b32.xlu0 %v3063_v30, %s2848_s8  ;;  %348 = vst.msk [vmem:[#allocation2 + $0x129] sm:$0xff] %vm268_vm0, %v259_v33  ;;  %351 = vst.msk [vmem:[#allocation2 + $0x151] sm:$0xff] %vm268_vm0, %v262_v34  ;;  %v3103_v43 = vld [vmem:[#allocation2 + $0x81] sm:$0xff]  ;;  %v3107_v44 = vld [vmem:[#allocation2 + $0xa9] sm:$0xff] }
  0x3c   : > { %350 = vst.msk [vmem:[#allocation2 + $0x141] sm:$0xff] %vm268_vm0, %v261_v35  ;;  %353 = vst.msk [vmem:[#allocation2 + $0x169] sm:$0xff] %vm268_vm0, %v264_v36  ;;  %v3111_v45 = vld [vmem:[#allocation2 + $0x99] sm:$0xff]  ;;  %v405_v46 = vld [vmem:[#allocation2 + $0xc1] sm:$0xff] }
  0x3d   : > { %352 = vst.msk [vmem:[#allocation2 + $0x159] sm:$0xff] %vm268_vm0, %v263_v37  ;;  %354 = vst.msk [vmem:[#allocation2 + $0x171] sm:$0xff] %vm268_vm0, %v265_v39  ;;  %v404_v47 = vld [vmem:[#allocation2 + $0xb1] sm:$0xff]  ;;  %v407_v48 = vld [vmem:[#allocation2 + $0xd9] sm:$0xff] }
  0x3e   : > { %v406_v49 = vld [vmem:[#allocation2 + $0xc9] sm:$0xff]  ;;  %v409_v50 = vld [vmem:[#allocation2 + $0xf1] sm:$0xff]  ;;  %v3134_v0 = vld [vmem:[#allocation2 + $0x1a] sm:$0xff] }
  0x3f   : > { %688 = vrot.lane.b32.xlu1 %v3067_v31, %s2848_s8  ;;  %694 = vrot.lane.b32.xlu0 %v3071_v32, %s2848_s8  ;;  %v408_v51 = vld [vmem:[#allocation2 + $0xe1] sm:$0xff]  ;;  %v411_v52 = vld [vmem:[#allocation2 + $0x109] sm:$0xff]  ;;  %v3139_v2 = vld [vmem:[#allocation2 + $0x32] sm:$0xff] }
  0x40   : > { %v410_v53 = vld [vmem:[#allocation2 + $0xf9] sm:$0xff]  ;;  %v413_v54 = vld [vmem:[#allocation2 + $0x121] sm:$0xff]  ;;  %v3146_v4 = vld [vmem:[#allocation2 + $0x4a] sm:$0xff] }
  0x41   : > { %v412_v55 = vld [vmem:[#allocation2 + $0x111] sm:$0xff]  ;;  %v415_v56 = vld [vmem:[#allocation2 + $0x139] sm:$0xff]  ;;  %v3142_v3 = vld [vmem:[#allocation2 + $0x22] sm:$0xff] }
  0x42   : > { %v414_v57 = vld [vmem:[#allocation2 + $0x129] sm:$0xff]  ;;  %v417_v58 = vld [vmem:[#allocation2 + $0x151] sm:$0xff]  ;;  %v3150_v5 = vld [vmem:[#allocation2 + $0x3a] sm:$0xff] }
  0x43   : > { %692 = vrot.lane.b32.xlu1 %v3083_v38, %s2848_s8  ;;  %698 = vrot.lane.b32.xlu0 %v3091_v40, %s2848_s8  ;;  %v416_v59 = vld [vmem:[#allocation2 + $0x141] sm:$0xff]  ;;  %v419_v60 = vld [vmem:[#allocation2 + $0x169] sm:$0xff]  ;;  %v3158_v7 = vld [vmem:[#allocation2 + $0x52] sm:$0xff] }
  0x44   : > { %v418_v61 = vld [vmem:[#allocation2 + $0x159] sm:$0xff]  ;;  %v420_v63 = vld [vmem:[#allocation2 + $0x171] sm:$0xff]  ;;  %v3154_v6 = vld [vmem:[#allocation2 + $0x62] sm:$0xff] }
  0x45   : > { %v3162_v8 = vld [vmem:[#allocation2 + $0x7a] sm:$0xff]  ;;  %v3166_v9 = vld [vmem:[#allocation2 + $0x6a] sm:$0xff]  ;;  %v3170_v10 = vld [vmem:[#allocation2 + $0x92] sm:$0xff] }
  0x46   : > { %v3174_v11 = vld [vmem:[#allocation2 + $0x82] sm:$0xff]  ;;  %v3178_v12 = vld [vmem:[#allocation2 + $0xaa] sm:$0xff]  ;;  %v3182_v13 = vld [vmem:[#allocation2 + $0x9a] sm:$0xff] }
  0x47   : > { %696 = vrot.lane.b32.xlu1 %v3095_v41, %s2848_s8  ;;  %702 = vrot.lane.b32.xlu0 %v3099_v42, %s2848_s8  ;;  %v3186_v14 = vld [vmem:[#allocation2 + $0xc2] sm:$0xff]  ;;  %v3190_v15 = vld [vmem:[#allocation2 + $0xb2] sm:$0xff]  ;;  %v439_v16 = vld [vmem:[#allocation2 + $0xda] sm:$0xff] }
  0x48   : > { %v3196_v17 = vld [vmem:[#allocation2 + $0xca] sm:$0xff]  ;;  %v441_v18 = vld [vmem:[#allocation2 + $0xf2] sm:$0xff]  ;;  %v440_v19 = vld [vmem:[#allocation2 + $0xe2] sm:$0xff] }
  0x49   : > { %v443_v20 = vld [vmem:[#allocation2 + $0x10a] sm:$0xff]  ;;  %v442_v21 = vld [vmem:[#allocation2 + $0xfa] sm:$0xff]  ;;  %v445_v22 = vld [vmem:[#allocation2 + $0x122] sm:$0xff] }
  0x4a   : > { %v444_v23 = vld [vmem:[#allocation2 + $0x112] sm:$0xff]  ;;  %v447_v24 = vld [vmem:[#allocation2 + $0x13a] sm:$0xff]  ;;  %v446_v29 = vld [vmem:[#allocation2 + $0x12a] sm:$0xff] }
  0x4b   : > { %700 = vrot.lane.b32.xlu1 %v3103_v43, %s2848_s8  ;;  %706 = vrot.lane.b32.xlu0 %v3107_v44, %s2848_s8  ;;  %v449_v33 = vld [vmem:[#allocation2 + $0x152] sm:$0xff]  ;;  %v448_v35 = vld [vmem:[#allocation2 + $0x142] sm:$0xff]  ;;  %v451_v37 = vld [vmem:[#allocation2 + $0x16a] sm:$0xff] }
  0x4f   : > { %704 = vrot.lane.b32.xlu1 %v3111_v45, %s2848_s8  ;;  %710 = vrot.lane.b32.xlu0 %v405_v46, %s2848_s8  ;;  %v450_v46 = vld [vmem:[#allocation2 + $0x15a] sm:$0xff] }
  0x53   : > { %708 = vrot.lane.b32.xlu1 %v404_v47, %s2848_s8  ;;  %714 = vrot.lane.b32.xlu0 %v407_v48, %s2848_s8 }
  0x57   : > { %712 = vrot.lane.b32.xlu1 %v406_v49, %s2848_s8  ;;  %718 = vrot.lane.b32.xlu0 %v409_v50, %s2848_s8  ;;  %v3225_v49 = vld [vmem:[#allocation2 + $0x18] sm:$0xff] }
  0x58   : > { %v452_v50 = vld [vmem:[#allocation2 + $0x172] sm:$0xff] }
  0x5b   : > { %716 = vrot.lane.b32.xlu1 %v408_v51, %s2848_s8  ;;  %722 = vrot.lane.b32.xlu0 %v411_v52, %s2848_s8 }
  0x5f   : > { %720 = vrot.lane.b32.xlu1 %v410_v53, %s2848_s8  ;;  %726 = vrot.lane.b32.xlu0 %v413_v54, %s2848_s8  ;;  %v3234_v53 = vld [vmem:[#allocation2 + $0x30] sm:$0xff] }
  0x63   : > { %724 = vrot.lane.b32.xlu1 %v412_v55, %s2848_s8  ;;  %730 = vrot.lane.b32.xlu0 %v415_v56, %s2848_s8  ;;  %v3240_v55 = vld [vmem:[#allocation2 + $0x20] sm:$0xff] }
  0x67   : > { %728 = vrot.lane.b32.xlu1 %v414_v57, %s2848_s8  ;;  %734 = vrot.lane.b32.xlu0 %v417_v58, %s2848_s8  ;;  %v3246_v57 = vld [vmem:[#allocation2 + $0x48] sm:$0xff] }
  0x6b   : > { %732 = vrot.lane.b32.xlu1 %v416_v59, %s2848_s8  ;;  %738 = vrot.lane.b32.xlu0 %v419_v60, %s2848_s8  ;;  %v3252_v59 = vld [vmem:[#allocation2 + $0x38] sm:$0xff] }
  0x6f   : > { %736 = vrot.lane.b32.xlu1 %v418_v61, %s2848_s8  ;;  %806 = vrot.lane.b32.xlu0 %v421_v62, %s2849_s9  ;;  %v3258_v61 = vld [vmem:[#allocation2 + $0x60] sm:$0xff] }
  0x73   : > { %740 = vrot.lane.b32.xlu1 %v420_v63, %s2848_s8  ;;  %810 = vrot.lane.b32.xlu0 %v3134_v0, %s2849_s9  ;;  %v3264_v63 = vld [vmem:[#allocation2 + $0x50] sm:$0xff] }
  0x77   : > { %808 = vrot.lane.b32.xlu1 %v422_v1, %s2849_s9  ;;  %814 = vrot.lane.b32.xlu0 %v3139_v2, %s2849_s9 }
  0x7b   : > { %812 = vrot.lane.b32.xlu1 %v3142_v3, %s2849_s9  ;;  %818 = vrot.lane.b32.xlu0 %v3146_v4, %s2849_s9 }
  0x7f   : > { %816 = vrot.lane.b32.xlu1 %v3150_v5, %s2849_s9  ;;  %822 = vrot.lane.b32.xlu0 %v3154_v6, %s2849_s9 }
  0x83   : > { %820 = vrot.lane.b32.xlu1 %v3158_v7, %s2849_s9  ;;  %826 = vrot.lane.b32.xlu0 %v3162_v8, %s2849_s9 }
  0x87   : > { %824 = vrot.lane.b32.xlu1 %v3166_v9, %s2849_s9  ;;  %830 = vrot.lane.b32.xlu0 %v3170_v10, %s2849_s9 }
  0x8b   : > { %828 = vrot.lane.b32.xlu1 %v3174_v11, %s2849_s9  ;;  %834 = vrot.lane.b32.xlu0 %v3178_v12, %s2849_s9 }
  0x8f   : > { %832 = vrot.lane.b32.xlu1 %v3182_v13, %s2849_s9  ;;  %838 = vrot.lane.b32.xlu0 %v3186_v14, %s2849_s9  ;;  %v3206_v28 = vpop.permute.xlu0 %678 }
  0x93   : > { %836 = vrot.lane.b32.xlu1 %v3190_v15, %s2849_s9  ;;  %842 = vrot.lane.b32.xlu0 %v439_v16, %s2849_s9  ;;  %v3270_v16 = vld [vmem:[#allocation2 + $0x78] sm:$0xff] }
  0x97   : > { %840 = vrot.lane.b32.xlu1 %v3196_v17, %s2849_s9  ;;  %846 = vrot.lane.b32.xlu0 %v441_v18, %s2849_s9 }
  0x9b   : > { %844 = vrot.lane.b32.xlu1 %v440_v19, %s2849_s9  ;;  %850 = vrot.lane.b32.xlu0 %v443_v20, %s2849_s9  ;;  %v3276_v19 = vld [vmem:[#allocation2 + $0x68] sm:$0xff] }
  0x9f   : > { %848 = vrot.lane.b32.xlu1 %v442_v21, %s2849_s9  ;;  %854 = vrot.lane.b32.xlu0 %v445_v22, %s2849_s9  ;;  %v3282_v21 = vld [vmem:[#allocation2 + $0x90] sm:$0xff] }
  0xa0   : > { %v3210_v34 = vpop.permute.xlu0 %680 }
  0xa3   : > { %852 = vrot.lane.b32.xlu1 %v444_v23, %s2849_s9  ;;  %858 = vrot.lane.b32.xlu0 %v447_v24, %s2849_s9  ;;  %v3288_v23 = vld [vmem:[#allocation2 + $0x80] sm:$0xff] }
  0xa7   : > { %856 = vrot.lane.b32.xlu1 %v446_v29, %s2849_s9  ;;  %862 = vrot.lane.b32.xlu0 %v449_v33, %s2849_s9  ;;  %v3294_v29 = vld [vmem:[#allocation2 + $0xa8] sm:$0xff] }
  0xa8   : > { %4350 = vst [vmem:[#allocation17_spill] sm:$0xff] %v3294_v29 }
  0xa9   : > { %v3214_v36 = vpop.permute.xlu1 %682  ;;  %v3216_v39 = vpop.permute.xlu0 %686 }
  0xab   : > { %860 = vrot.lane.b32.xlu1 %v448_v35, %s2849_s9  ;;  %866 = vrot.lane.b32.xlu0 %v451_v37, %s2849_s9  ;;  %v3300_v35 = vld [vmem:[#allocation2 + $0x98] sm:$0xff] }
  0xac   : > { %4352 = vst [vmem:[#allocation19_spill] sm:$0xff] %v3300_v35 }
  0xad   : > { %v3220_v47 = vpop.permute.xlu1 %684  ;;  %v3222_v48 = vpop.permute.xlu0 %690 }
  0xaf   : > { %864 = vrot.lane.b32.xlu1 %v450_v46, %s2849_s9  ;;  %934 = vrot.lane.b32.xlu0 %v3225_v49, %s2850_s10  ;;  %v3306_v46 = vld [vmem:[#allocation2 + $0xc0] sm:$0xff] }
  0xb1   : > { %v3229_v51 = vpop.permute.xlu1 %688  ;;  %v3231_v52 = vpop.permute.xlu0 %694 }
  0xb2   : > { %4339 = vst [vmem:[#allocation6_spill] sm:$0xff] %v3231_v52 }
  0xb3   : > { %868 = vrot.lane.b32.xlu1 %v452_v50, %s2849_s9  ;;  %938 = vrot.lane.b32.xlu0 %v3234_v53, %s2850_s10  ;;  %s2854_s9 = smov 28  }
  0xb5   : > { %v3238_v54 = vpop.permute.xlu1 %692  ;;  %v3242_v56 = vpop.permute.xlu0 %698 }
  0xb6   : > { %4340 = vst [vmem:[#allocation7_spill] sm:$0xff] %v3238_v54  ;;  %4341 = vst [vmem:[#allocation8_spill] sm:$0xff] %v3242_v56 }
  0xb7   : > { %936 = vrot.lane.b32.xlu1 %v3240_v55, %s2850_s10  ;;  %942 = vrot.lane.b32.xlu0 %v3246_v57, %s2850_s10 }
  0xb9   : > { %v3250_v58 = vpop.permute.xlu1 %696  ;;  %v3254_v60 = vpop.permute.xlu0 %702 }
  0xba   : > { %4342 = vst [vmem:[#allocation9_spill] sm:$0xff] %v3250_v58  ;;  %4343 = vst [vmem:[#allocation10_spill] sm:$0xff] %v3254_v60  ;;  %v3360_v58 = vld [vmem:[#allocation2 + $0x110] sm:$0xff] }
  0xbb   : > { %940 = vrot.lane.b32.xlu1 %v3252_v59, %s2850_s10  ;;  %946 = vrot.lane.b32.xlu0 %v3258_v61, %s2850_s10 }
  0xbd   : > { %v3262_v62 = vpop.permute.xlu1 %700  ;;  %v3266_v1 = vpop.permute.xlu0 %706 }
  0xbe   : > { %4344 = vst [vmem:[#allocation11_spill] sm:$0xff] %v3262_v62  ;;  %4345 = vst [vmem:[#allocation12_spill] sm:$0xff] %v3266_v1  ;;  %v3348_v62 = vld [vmem:[#allocation2 + $0xf8] sm:$0xff] }
  0xbf   : > { %944 = vrot.lane.b32.xlu1 %v3264_v63, %s2850_s10  ;;  %950 = vrot.lane.b32.xlu0 %v3270_v16, %s2850_s10 }
  0xc1   : > { %v3274_v18 = vpop.permute.xlu1 %704  ;;  %v3278_v20 = vpop.permute.xlu0 %710 }
  0xc2   : > { %4346 = vst [vmem:[#allocation13_spill] sm:$0xff] %v3274_v18  ;;  %4347 = vst [vmem:[#allocation14_spill] sm:$0xff] %v3278_v20  ;;  %v3336_v18 = vld [vmem:[#allocation2 + $0xe0] sm:$0xff] }
  0xc3   : > { %948 = vrot.lane.b32.xlu1 %v3276_v19, %s2850_s10  ;;  %954 = vrot.lane.b32.xlu0 %v3282_v21, %s2850_s10 }
  0xc5   : > { %v3286_v22 = vpop.permute.xlu1 %708  ;;  %v3290_v24 = vpop.permute.xlu0 %714 }
  0xc6   : > { %4348 = vst [vmem:[#allocation15_spill] sm:$0xff] %v3286_v22  ;;  %4349 = vst [vmem:[#allocation16_spill] sm:$0xff] %v3290_v24  ;;  %v3312_v24 = vld [vmem:[#allocation2 + $0xb0] sm:$0xff]  ;;  %v3324_v22 = vld [vmem:[#allocation2 + $0xc8] sm:$0xff] }
  0xc7   : > { %952 = vrot.lane.b32.xlu1 %v3288_v23, %s2850_s10  ;;  %958 = vrot.lane.b32.xlu0 %v3294_v29, %s2850_s10  ;;  %4355 = vst [vmem:[#allocation22_spill] sm:$0xff] %v3312_v24 }
  0xc9   : > { %v3298_v33 = vpop.permute.xlu1 %712  ;;  %v3302_v37 = vpop.permute.xlu0 %718 }
  0xca   : > { %4351 = vst [vmem:[#allocation18_spill] sm:$0xff] %v3298_v33  ;;  %4353 = vst [vmem:[#allocation20_spill] sm:$0xff] %v3302_v37  ;;  %v3318_v33 = vld [vmem:[#allocation2 + $0xd8] sm:$0xff] }
  0xcb   : > { %956 = vrot.lane.b32.xlu1 %v3300_v35, %s2850_s10  ;;  %962 = vrot.lane.b32.xlu0 %v3306_v46, %s2850_s10 }
  0xcd   : > { %v3310_v50 = vpop.permute.xlu1 %716  ;;  %v3314_v20 = vpop.permute.xlu0 %722 }
  0xce   : > { %4354 = vst [vmem:[#allocation21_spill] sm:$0xff] %v3310_v50  ;;  %4356 = vst [vmem:[#allocation23_spill] sm:$0xff] %v3314_v20  ;;  %v3330_v50 = vld [vmem:[#allocation2 + $0xf0] sm:$0xff] }
  0xcf   : > { %960 = vrot.lane.b32.xlu1 %v3312_v24, %s2850_s10  ;;  %966 = vrot.lane.b32.xlu0 %v3318_v33, %s2850_s10 }
  0xd1   : > { %v3322_v37 = vpop.permute.xlu1 %720  ;;  %v3326_v1 = vpop.permute.xlu0 %726 }
  0xd2   : > { %4357 = vst [vmem:[#allocation24_spill] sm:$0xff] %v3322_v37  ;;  %4358 = vst [vmem:[#allocation25_spill] sm:$0xff] %v3326_v1  ;;  %v3342_v37 = vld [vmem:[#allocation2 + $0x108] sm:$0xff] }
  0xd3   : > { %964 = vrot.lane.b32.xlu1 %v3324_v22, %s2850_s10  ;;  %970 = vrot.lane.b32.xlu0 %v3330_v50, %s2850_s10  ;;  %4361 = vst [vmem:[#allocation28_spill] sm:$0xff] %v3342_v37 }
  0xd5   : > { %v3334_v20 = vpop.permute.xlu1 %724  ;;  %v3338_v60 = vpop.permute.xlu0 %730 }
  0xd6   : > { %4359 = vst [vmem:[#allocation26_spill] sm:$0xff] %v3334_v20  ;;  %4360 = vst [vmem:[#allocation27_spill] sm:$0xff] %v3338_v60  ;;  %v3354_v20 = vld [vmem:[#allocation2 + $0x120] sm:$0xff] }
  0xd7   : > { %968 = vrot.lane.b32.xlu1 %v3336_v18, %s2850_s10  ;;  %974 = vrot.lane.b32.xlu0 %v3342_v37, %s2850_s10  ;;  %4364 = vst [vmem:[#allocation31_spill] sm:$0xff] %v3354_v20 }
  0xd9   : > { %v3346_v1 = vpop.permute.xlu1 %728  ;;  %v3350_v56 = vpop.permute.xlu0 %734 }
  0xda   : > { %4362 = vst [vmem:[#allocation29_spill] sm:$0xff] %v3346_v1  ;;  %4363 = vst [vmem:[#allocation30_spill] sm:$0xff] %v3350_v56 }
  0xdb   : > { %972 = vrot.lane.b32.xlu1 %v3348_v62, %s2850_s10  ;;  %978 = vrot.lane.b32.xlu0 %v3354_v20, %s2850_s10 }
  0xdd   : > { %v3358_v60 = vpop.permute.xlu1 %732  ;;  %v3362_v52 = vpop.permute.xlu0 %738 }
  0xde   : > { %4365 = vst [vmem:[#allocation32_spill] sm:$0xff] %v3358_v60  ;;  %4366 = vst [vmem:[#allocation33_spill] sm:$0xff] %v3362_v52  ;;  %v1937_v60 = vld [vmem:[%s4329_s3 + $0x20] sm:$0xf] }
  0xdf   : > { %976 = vrot.lane.b32.xlu1 %v3360_v58, %s2850_s10  ;;  %1064 = vrot.lane.b32.xlu0 %v3055_v27, %s2851_s11  ;;  %v1936_v27 = vld [vmem:[%s4329_s3 + $0x18] sm:$0xff] }
  0xe0   : > { %2660 = vmatprep.subr.msk.mxu0 %vm2035_vm2, %v1937_v60  ;;  %2718 = vmatprep.subr.msk.mxu1 %vm2035_vm2, %v1937_v60 }
  0xe1   : > { %v3368_v56 = vpop.permute.xlu1 %736  ;;  %v3370_v1 = vpop.permute.xlu0 %806  ;;  %2661 = vmatpush3.msk.msra.mxu0 %vm2035_vm2, %v1937_v60  ;;  %2723 = vmatpush3.msk.msra.mxu1 %vm2035_vm2, %v1937_v60  ;;  %v1934_v60 = vld [vmem:[%s4329_s3 + $0x8] sm:$0xff] }
  0xe2   : > { %4367 = vst [vmem:[#allocation34_spill] sm:$0xff] %v3368_v56  ;;  %2662 = vmatprep.subr.mxu0 %v1936_v27  ;;  %v1935_v56 = vld [vmem:[%s4329_s3 + $0x10] sm:$0xff]  ;;  %2719 = vmatprep.subr.mxu1 %v1936_v27 }
  0xe3   : > { %1062 = vrot.lane.b32.xlu1 %v3046_v25, %s2851_s11  ;;  %1192 = vrot.lane.b32.xlu0 %v3142_v3, %s2852_s14 }
  0xe4   : > { %2663 = vmatpush3.msra.mxu0 %v1936_v27  ;;  %2724 = vmatpush3.msra.mxu1 %v1936_v27 }
  0xe5   : > { %v3379_v52 = vpop.permute.xlu1 %740  ;;  %v3384_v25 = vpop.permute.xlu0 %810  ;;  %2664 = vmatprep.subr.mxu0 %v1935_v56  ;;  %2720 = vmatprep.subr.mxu1 %v1935_v56 }
  0xe6   : > { %4368 = vst [vmem:[#allocation35_spill] sm:$0xff] %v3379_v52  ;;  %2665 = vmatpush3.msra.mxu0 %v1935_v56  ;;  %v1933_v52 = vld [vmem:[%s4329_s3] sm:$0xff]  ;;  %2725 = vmatpush3.msra.mxu1 %v1935_v56 }
  0xe7   : > { %1190 = vrot.lane.b32.xlu1 %v3134_v0, %s2852_s14  ;;  %1320 = vrot.lane.b32.xlu0 %v3252_v59, %s2853_s23 }
  0xe8   : > { %2666 = vmatprep.subr.mxu0 %v1934_v60  ;;  %2721 = vmatprep.subr.mxu1 %v1934_v60 }
  0xe9   : > { %v3393_v3 = vpop.permute.xlu1 %808  ;;  %v3398_v0 = vpop.permute.xlu0 %814  ;;  %2667 = vmatpush3.msra.mxu0 %v1934_v60  ;;  %2726 = vmatpush3.msra.mxu1 %v1934_v60 }
  0xea   : > { %2668 = vmatprep.subr.mxu0 %v1933_v52  ;;  %2722 = vmatprep.subr.mxu1 %v1933_v52 }
  0xeb   : > { %1318 = vrot.lane.b32.xlu1 %v3234_v53, %s2853_s23  ;;  %1066 = vrot.lane.b32.xlu0 %v3048_v26, %s2851_s11 }
  0xec   : > { %2669 = vmatpush3.msra.mxu0 %v1933_v52  ;;  %2727 = vmatpush3.msra.mxu1 %v1933_v52 }
  0xed   : > { %v3407_v20 = vpop.permute.xlu1 %812  ;;  %v3409_v27 = vpop.permute.xlu0 %818 }
  0xef   : > { %1446 = vrot.lane.b32.xlu1 %v3048_v26, %s2854_s9  ;;  %1574 = vrot.lane.b32.xlu0 %v3139_v2, %s2855_s12 }
  0xf1   : > { %v3415_v54 = vpop.permute.xlu1 %816  ;;  %v3417_v37 = vpop.permute.xlu0 %822 }
  0xf2   : > { %4369 = vst [vmem:[#allocation36_spill] sm:$0xff] %v3417_v37 }
  0xf3   : > { %1448 = vrot.lane.b32.xlu1 %v3067_v31, %s2854_s9  ;;  %1194 = vrot.lane.b32.xlu0 %v3139_v2, %s2852_s14 }
  0xf5   : > { %v3423_v56 = vpop.permute.xlu1 %820  ;;  %v3425_v26 = vpop.permute.xlu0 %826 }
  0xf6   : > { %4370 = vst [vmem:[#allocation37_spill] sm:$0xff] %v3425_v26 }
  0xf7   : > { %1068 = vrot.lane.b32.xlu1 %v3067_v31, %s2851_s11  ;;  %1196 = vrot.lane.b32.xlu0 %v3150_v5, %s2852_s14 }
  0xf9   : > { %v3431_v60 = vpop.permute.xlu1 %824  ;;  %v3433_v52 = vpop.permute.xlu0 %830 }
  0xfa   : > { %4371 = vst [vmem:[#allocation38_spill] sm:$0xff] %v3433_v52 }
  0xfb   : > { %1576 = vrot.lane.b32.xlu1 %v3150_v5, %s2855_s12  ;;  %1324 = vrot.lane.b32.xlu0 %v3264_v63, %s2853_s23 }
  0xfd   : > { %v3439_v2 = vpop.permute.xlu1 %828  ;;  %v3441_v37 = vpop.permute.xlu0 %834 }
  0xfe   : > { %4372 = vst [vmem:[#allocation39_spill] sm:$0xff] %v3441_v37 }
  0xff   : > { %1322 = vrot.lane.b32.xlu1 %v3246_v57, %s2853_s23  ;;  %1070 = vrot.lane.b32.xlu0 %v3063_v30, %s2851_s11 }
 0x101   : > { %v3447_v31 = vpop.permute.xlu1 %832  ;;  %v3449_v26 = vpop.permute.xlu0 %838 }
 0x102   : > { %4373 = vst [vmem:[#allocation40_spill] sm:$0xff] %v3447_v31  ;;  %4374 = vst [vmem:[#allocation41_spill] sm:$0xff] %v3449_v26 }
 0x103   : > { %1450 = vrot.lane.b32.xlu1 %v3063_v30, %s2854_s9  ;;  %1578 = vrot.lane.b32.xlu0 %v3146_v4, %s2855_s12 }
 0x105   : > { %v3455_v5 = vpop.permute.xlu1 %836  ;;  %v3457_v52 = vpop.permute.xlu0 %842 }
 0x106   : > { %4375 = vst [vmem:[#allocation42_spill] sm:$0xff] %v3455_v5  ;;  %4376 = vst [vmem:[#allocation43_spill] sm:$0xff] %v3457_v52 }
 0x107   : > { %1452 = vrot.lane.b32.xlu1 %v3083_v38, %s2854_s9  ;;  %1198 = vrot.lane.b32.xlu0 %v3146_v4, %s2852_s14 }
 0x109   : > { %v3463_v37 = vpop.permute.xlu1 %840  ;;  %v3465_v31 = vpop.permute.xlu0 %846 }
 0x10a   : > { %4377 = vst [vmem:[#allocation44_spill] sm:$0xff] %v3463_v37  ;;  %4378 = vst [vmem:[#allocation45_spill] sm:$0xff] %v3465_v31 }
 0x10b   : > { %1072 = vrot.lane.b32.xlu1 %v3083_v38, %s2851_s11  ;;  %1200 = vrot.lane.b32.xlu0 %v3158_v7, %s2852_s14 }
 0x10d   : > { %v3471_v30 = vpop.permute.xlu1 %844  ;;  %v3473_v26 = vpop.permute.xlu0 %850 }
 0x10e   : > { %4379 = vst [vmem:[#allocation46_spill] sm:$0xff] %v3471_v30  ;;  %4380 = vst [vmem:[#allocation47_spill] sm:$0xff] %v3473_v26 }
 0x10f   : > { %1580 = vrot.lane.b32.xlu1 %v3158_v7, %s2855_s12  ;;  %1328 = vrot.lane.b32.xlu0 %v3276_v19, %s2853_s23 }
 0x111   : > { %v3479_v4 = vpop.permute.xlu1 %848  ;;  %v3481_v52 = vpop.permute.xlu0 %854 }
 0x112   : > { %4381 = vst [vmem:[#allocation48_spill] sm:$0xff] %v3479_v4  ;;  %4382 = vst [vmem:[#allocation49_spill] sm:$0xff] %v3481_v52 }
 0x113   : > { %1326 = vrot.lane.b32.xlu1 %v3258_v61, %s2853_s23  ;;  %1074 = vrot.lane.b32.xlu0 %v3071_v32, %s2851_s11 }
 0x115   : > { %v3487_v38 = vpop.permute.xlu1 %852  ;;  %v3489_v31 = vpop.permute.xlu0 %858 }
 0x116   : > { %4383 = vst [vmem:[#allocation50_spill] sm:$0xff] %v3487_v38  ;;  %4384 = vst [vmem:[#allocation51_spill] sm:$0xff] %v3489_v31 }
 0x117   : > { %1454 = vrot.lane.b32.xlu1 %v3071_v32, %s2854_s9  ;;  %1582 = vrot.lane.b32.xlu0 %v3154_v6, %s2855_s12 }
 0x119   : > { %v3495_v7 = vpop.permute.xlu1 %856  ;;  %v3497_v26 = vpop.permute.xlu0 %862 }
 0x11a   : > { %4385 = vst [vmem:[#allocation52_spill] sm:$0xff] %v3495_v7  ;;  %4386 = vst [vmem:[#allocation53_spill] sm:$0xff] %v3497_v26 }
 0x11b   : > { %1456 = vrot.lane.b32.xlu1 %v3095_v41, %s2854_s9  ;;  %1202 = vrot.lane.b32.xlu0 %v3154_v6, %s2852_s14 }
 0x11d   : > { %v3503_v52 = vpop.permute.xlu1 %860  ;;  %v3505_v38 = vpop.permute.xlu0 %866 }
 0x11e   : > { %4387 = vst [vmem:[#allocation54_spill] sm:$0xff] %v3503_v52  ;;  %4388 = vst [vmem:[#allocation55_spill] sm:$0xff] %v3505_v38 }
 0x11f   : > { %1076 = vrot.lane.b32.xlu1 %v3095_v41, %s2851_s11  ;;  %1204 = vrot.lane.b32.xlu0 %v3166_v9, %s2852_s14 }
 0x121   : > { %v3511_v32 = vpop.permute.xlu1 %864  ;;  %v3513_v31 = vpop.permute.xlu0 %934 }
 0x122   : > { %4389 = vst [vmem:[#allocation56_spill] sm:$0xff] %v3511_v32 }
 0x123   : > { %1584 = vrot.lane.b32.xlu1 %v3166_v9, %s2855_s12  ;;  %1332 = vrot.lane.b32.xlu0 %v3288_v23, %s2853_s23 }
 0x125   : > { %v3519_v6 = vpop.permute.xlu1 %868  ;;  %v3521_v26 = vpop.permute.xlu0 %938 }
 0x126   : > { %4390 = vst [vmem:[#allocation57_spill] sm:$0xff] %v3519_v6 }
 0x127   : > { %1330 = vrot.lane.b32.xlu1 %v3270_v16, %s2853_s23  ;;  %1078 = vrot.lane.b32.xlu0 %v3091_v40, %s2851_s11 }
 0x129   : > { %v3527_v41 = vpop.permute.xlu1 %936  ;;  %v3529_v38 = vpop.permute.xlu0 %942 }
 0x12b   : > { %1458 = vrot.lane.b32.xlu1 %v3091_v40, %s2854_s9  ;;  %1586 = vrot.lane.b32.xlu0 %v3162_v8, %s2855_s12 }
 0x12d   : > { %v3535_v9 = vpop.permute.xlu1 %940  ;;  %v3537_v6 = vpop.permute.xlu0 %946 }
 0x12f   : > { %1460 = vrot.lane.b32.xlu1 %v3103_v43, %s2854_s9  ;;  %1206 = vrot.lane.b32.xlu0 %v3162_v8, %s2852_s14 }
 0x131   : > { %v3543_v32 = vpop.permute.xlu1 %944  ;;  %v3545_v52 = vpop.permute.xlu0 %950 }
 0x133   : > { %1080 = vrot.lane.b32.xlu1 %v3103_v43, %s2851_s11  ;;  %1208 = vrot.lane.b32.xlu0 %v3174_v11, %s2852_s14 }
 0x135   : > { %v3551_v40 = vpop.permute.xlu1 %948  ;;  %v3553_v7 = vpop.permute.xlu0 %954 }
 0x137   : > { %1588 = vrot.lane.b32.xlu1 %v3174_v11, %s2855_s12  ;;  %1336 = vrot.lane.b32.xlu0 %v3300_v35, %s2853_s23 }
 0x139   : > { %v3559_v8 = vpop.permute.xlu1 %952  ;;  %v3561_v4 = vpop.permute.xlu0 %958 }
 0x13b   : > { %1334 = vrot.lane.b32.xlu1 %v3282_v21, %s2853_s23  ;;  %1082 = vrot.lane.b32.xlu0 %v3099_v42, %s2851_s11 }
 0x13d   : > { %v3567_v43 = vpop.permute.xlu1 %956  ;;  %v3569_v30 = vpop.permute.xlu0 %962 }
 0x13e   : > { %4391 = vst [vmem:[#allocation58_spill] sm:$0xff] %v3569_v30 }
 0x13f   : > { %1462 = vrot.lane.b32.xlu1 %v3099_v42, %s2854_s9  ;;  %1590 = vrot.lane.b32.xlu0 %v3170_v10, %s2855_s12 }
 0x141   : > { %v3575_v11 = vpop.permute.xlu1 %960  ;;  %v3577_v37 = vpop.permute.xlu0 %966 }
 0x142   : > { %4392 = vst [vmem:[#allocation59_spill] sm:$0xff] %v3575_v11  ;;  %4393 = vst [vmem:[#allocation60_spill] sm:$0xff] %v3577_v37 }
 0x143   : > { %1464 = vrot.lane.b32.xlu1 %v3111_v45, %s2854_s9  ;;  %1210 = vrot.lane.b32.xlu0 %v3170_v10, %s2852_s14 }
 0x145   : > { %v3583_v5 = vpop.permute.xlu1 %964  ;;  %v3585_v35 = vpop.permute.xlu0 %970 }
 0x146   : > { %4394 = vst [vmem:[#allocation61_spill] sm:$0xff] %v3583_v5  ;;  %4395 = vst [vmem:[#allocation62_spill] sm:$0xff] %v3585_v35 }
 0x147   : > { %1084 = vrot.lane.b32.xlu1 %v3111_v45, %s2851_s11  ;;  %1212 = vrot.lane.b32.xlu0 %v3182_v13, %s2852_s14  ;;  %v592_v45 = vld [vmem:[#allocation2 + $0xa9] sm:$0xff] }
 0x149   : > { %v3591_v42 = vpop.permute.xlu1 %968  ;;  %v3593_v30 = vpop.permute.xlu0 %974 }
 0x14a   : > { %4396 = vst [vmem:[#allocation63_spill] sm:$0xff] %v3591_v42  ;;  %4397 = vst [vmem:[#allocation64_spill] sm:$0xff] %v3593_v30 }
 0x14b   : > { %1592 = vrot.lane.b32.xlu1 %v3182_v13, %s2855_s12  ;;  %1340 = vrot.lane.b32.xlu0 %v3312_v24, %s2853_s23  ;;  %v593_v13 = vld [vmem:[#allocation2 + $0xb1] sm:$0xff] }
 0x14d   : > { %v3599_v10 = vpop.permute.xlu1 %972  ;;  %v3601_v37 = vpop.permute.xlu0 %978 }
 0x14e   : > { %4398 = vst [vmem:[#allocation65_spill] sm:$0xff] %v3599_v10  ;;  %4399 = vst [vmem:[#allocation66_spill] sm:$0xff] %v3601_v37  ;;  %v357_v37 = vld [vmem:[#allocation2] sm:$0xff] }
 0x14f   : > { %1338 = vrot.lane.b32.xlu1 %v3294_v29, %s2853_s23  ;;  %1086 = vrot.lane.b32.xlu0 %v3107_v44, %s2851_s11 }
 0x151   : > { %v3607_v35 = vpop.permute.xlu1 %976  ;;  %v1065_v30 = vpop.permute.xlu0 %1064 }
 0x152   : > { %4400 = vst [vmem:[#allocation67_spill] sm:$0xff] %v3607_v35 }
 0x153   : > { %1466 = vrot.lane.b32.xlu1 %v592_v45, %s2854_s9  ;;  %1594 = vrot.lane.b32.xlu0 %v3178_v12, %s2855_s12  ;;  %v1670_v45 = vsel %vm268_vm0, %v357_v37, %v3206_v28 }
 0x154   : > { %v1703_v35 = vsel %vm1702_vm3, %v1670_v45, %v3370_v1  ;;  %v595_v45 = vld [vmem:[#allocation2 + $0xc9] sm:$0xff] }
 0x155   : > { %v1063_v42 = vpop.permute.xlu1 %1062  ;;  %v1193_v10 = vpop.permute.xlu0 %1192  ;;  %v1736_v29 = vsel %vm1735_vm4, %v1703_v35, %v3513_v31  ;;  %v499_v31 = vld [vmem:[#allocation2 + $0xc1] sm:$0xff] }
 0x157   : > { %1468 = vrot.lane.b32.xlu1 %v593_v13, %s2854_s9  ;;  %1214 = vrot.lane.b32.xlu0 %v3178_v12, %s2852_s14  ;;  %v1769_v12 = vsel %vm1768_vm5, %v1736_v29, %v1063_v42 }
 0x159   : > { %v1191_v5 = vpop.permute.xlu1 %1190  ;;  %v1321_v44 = vpop.permute.xlu0 %1320 }
 0x15a   : > { %v1802_v28 = vsel %vm1801_vm6, %v1769_v12, %v1191_v5 }
 0x15b   : > { %1088 = vrot.lane.b32.xlu1 %v593_v13, %s2851_s11  ;;  %1216 = vrot.lane.b32.xlu0 %v3190_v15, %s2852_s14 }
 0x15d   : > { %v1319_v24 = vpop.permute.xlu1 %1318  ;;  %v1067_v11 = vpop.permute.xlu0 %1066 }
 0x15e   : > { %v1835_v1 = vsel %vm1834_vm8, %v1802_v28, %v1319_v24 }
 0x15f   : > { %1596 = vrot.lane.b32.xlu1 %v3190_v15, %s2855_s12  ;;  %1344 = vrot.lane.b32.xlu0 %v3324_v22, %s2853_s23  ;;  %v358_v15 = vld [vmem:[#allocation2 + $0x8] sm:$0xff] }
 0x160   : > { %v1671_v22 = vsel %vm268_vm0, %v358_v15, %v3210_v34 }
 0x161   : > { %v1447_v37 = vpop.permute.xlu1 %1446  ;;  %v1575_v29 = vpop.permute.xlu0 %1574  ;;  %v1704_v13 = vsel %vm1702_vm3, %v1671_v22, %v3393_v3 }
 0x162   : > { %v1868_v35 = vsel %vm1867_vm7, %v1835_v1, %v1447_v37 }
 0x163   : > { %1342 = vrot.lane.b32.xlu1 %v3306_v46, %s2853_s23  ;;  %v1901_v42 = vsel %vm1900_vm9, %v1868_v35, %v1575_v29  ;;  %1090 = vrot.lane.b32.xlu0 %v499_v31, %s2851_s11  ;;  %v1737_v46 = vsel %vm1735_vm4, %v1704_v13, %v3527_v41 }
 0x164   : > { %2670 = vmatprep.mubr.msk.f32.mxu0 %vm1938_vm10, %v1901_v42  ;;  %v1770_v28 = vsel %vm1768_vm5, %v1737_v46, %v1065_v30  ;;  %v1672_v30 = vsel %vm268_vm0, %v3225_v49, %v3214_v36  ;;  %v597_v46 = vld [vmem:[#allocation2 + $0xe1] sm:$0xff] }
 0x165   : > { %v1449_v24 = vpop.permute.xlu1 %1448  ;;  %v1195_v5 = vpop.permute.xlu0 %1194  ;;  %v1803_v1 = vsel %vm1801_vm6, %v1770_v28, %v1193_v10  ;;  %v1705_v10 = vsel %vm1702_vm3, %v1672_v30, %v3384_v25 }
 0x166   : > { %v1836_v34 = vsel %vm1834_vm8, %v1803_v1, %v1321_v44 }
 0x167   : > { %1470 = vrot.lane.b32.xlu1 %v499_v31, %s2854_s9  ;;  %1598 = vrot.lane.b32.xlu0 %v3186_v14, %s2855_s12  ;;  %v1869_v35 = vsel %vm1867_vm7, %v1836_v34, %v1449_v24  ;;  %v501_v24 = vld [vmem:[#allocation2 + $0xd9] sm:$0xff] }
 0x169   : > { %v1069_v12 = vpop.permute.xlu1 %1068  ;;  %v1197_v37 = vpop.permute.xlu0 %1196 }
 0x16b   : > { %1472 = vrot.lane.b32.xlu1 %v595_v45, %s2854_s9  ;;  %1218 = vrot.lane.b32.xlu0 %v3186_v14, %s2852_s14  ;;  %v1738_v14 = vsel %vm1735_vm4, %v1705_v10, %v3521_v26 }
 0x16c   : > { %v1771_v29 = vsel %vm1768_vm5, %v1738_v14, %v1067_v11 }
 0x16d   : > { %v1577_v3 = vpop.permute.xlu1 %1576  ;;  %v1325_v31 = vpop.permute.xlu0 %1324  ;;  %v1804_v42 = vsel %vm1801_vm6, %v1771_v29, %v1195_v5  ;;  %v628_v5 = vld [vmem:[#allocation2 + $0xda] sm:$0xff] }
 0x16e   : > { %v1902_v41 = vsel %vm1900_vm9, %v1869_v35, %v1577_v3  ;;  %v266_v3 = vld [vmem:[%s3001_s7 + $0xf0] sm:$0xff] }
 0x16f   : > { %1092 = vrot.lane.b32.xlu1 %v595_v45, %s2851_s11  ;;  %2671 = vmatmul.mubr.msk.f32.vlgmr.msra.gmra.mxu0 %vm1938_vm10, %v1902_v41  ;;  %355 = vst.msk [vmem:[#allocation2 + $0x181] sm:$0xff] %vm268_vm0, %v266_v3  ;;  %v632_v3 = vld [vmem:[#allocation2 + $0x10a] sm:$0xff] }
 0x170   : > { %1220 = vrot.lane.b32.xlu0 %v3196_v17, %s2852_s14 }
 0x171   : > { %v1323_v44 = vpop.permute.xlu1 %1322  ;;  %v1071_v15 = vpop.permute.xlu0 %1070 }
 0x172   : > { %v1837_v36 = vsel %vm1834_vm8, %v1804_v42, %v1323_v44  ;;  %v503_v42 = vld [vmem:[#allocation2 + $0xf1] sm:$0xff] }
 0x173   : > { %1600 = vrot.lane.b32.xlu1 %v3196_v17, %s2855_s12  ;;  %v1673_v17 = vsel %vm268_vm0, %v3240_v55, %v3220_v47 }
 0x174   : > { %1348 = vrot.lane.b32.xlu0 %v3336_v18, %s2853_s23  ;;  %v1706_v18 = vsel %vm1702_vm3, %v1673_v17, %v3407_v20 }
 0x175   : > { %v1451_v49 = vpop.permute.xlu1 %1450  ;;  %v1579_v22 = vpop.permute.xlu0 %1578  ;;  %v1739_v13 = vsel %vm1735_vm4, %v1706_v18, %v3535_v9 }
 0x176   : > { %v1870_v25 = vsel %vm1867_vm7, %v1837_v36, %v1451_v49  ;;  %v1675_v36 = vsel %vm268_vm0, %v3252_v59, %v3229_v51 }
 0x177   : > { %1346 = vrot.lane.b32.xlu1 %v3318_v33, %s2853_s23  ;;  %v1903_v26 = vsel %vm1900_vm9, %v1870_v25, %v1579_v22  ;;  %v1772_v33 = vsel %vm1768_vm5, %v1739_v13, %v1069_v12  ;;  %v534_v12 = vld [vmem:[#allocation2 + $0xe2] sm:$0xff]  ;;  %v630_v25 = vld [vmem:[#allocation2 + $0xf2] sm:$0xff] }
 0x178   : > { %1094 = vrot.lane.b32.xlu0 %v501_v24, %s2851_s11  ;;  %2673 = vmatprep.mubr.msk.f32.mxu0 %vm1938_vm10, %v1903_v26  ;;  %v1805_v55 = vsel %vm1801_vm6, %v1772_v33, %v1197_v37  ;;  %v1674_v37 = vsel %vm268_vm0, %v3234_v53, %v3216_v39  ;;  %v267_v39 = vld [vmem:[%s3001_s7 + $0xf8] sm:$0xff] }
 0x179   : > { %v1453_v11 = vpop.permute.xlu1 %1452  ;;  %v1199_v45 = vpop.permute.xlu0 %1198  ;;  %v1838_v20 = vsel %vm1834_vm8, %v1805_v55, %v1325_v31  ;;  %v1707_v41 = vsel %vm1702_vm3, %v1674_v37, %v3398_v0  ;;  %356 = vst.msk [vmem:[#allocation2 + $0x189] sm:$0xff] %vm268_vm0, %v267_v39  ;;  %v599_v26 = vld [vmem:[#allocation2 + $0xf9] sm:$0xff] }
 0x17a   : > { %v1871_v1 = vsel %vm1867_vm7, %v1838_v20, %v1453_v11  ;;  %v1740_v30 = vsel %vm1735_vm4, %v1707_v41, %v3529_v38 }
 0x17b   : > { %1474 = vrot.lane.b32.xlu1 %v501_v24, %s2854_s9  ;;  %v1773_v10 = vsel %vm1768_vm5, %v1740_v30, %v1071_v15 }
 0x17c   : > { %1602 = vrot.lane.b32.xlu0 %v628_v5, %s2855_s12  ;;  %v1806_v14 = vsel %vm1801_vm6, %v1773_v10, %v1199_v45  ;;  %v1676_v45 = vsel %vm268_vm0, %v3246_v57, %v3222_v48  ;;  %v601_v10 = vld [vmem:[#allocation2 + $0x111] sm:$0xff] }
 0x17d   : > { %v1073_v47 = vpop.permute.xlu1 %1072  ;;  %v1201_v28 = vpop.permute.xlu0 %1200  ;;  %v1709_v33 = vsel %vm1702_vm3, %v1676_v45, %v3409_v27  ;;  %v505_v27 = vld [vmem:[#allocation2 + $0x109] sm:$0xff] }
 0x17f   : > { %1476 = vrot.lane.b32.xlu1 %v597_v46, %s2854_s9 }
 0x180   : > { %1222 = vrot.lane.b32.xlu0 %v628_v5, %s2852_s14  ;;  %v536_v5 = vld [vmem:[#allocation2 + $0xfa] sm:$0xff] }
 0x181   : > { %v1581_v9 = vpop.permute.xlu1 %1580  ;;  %v1329_v35 = vpop.permute.xlu0 %1328 }
 0x182   : > { %v1904_v34 = vsel %vm1900_vm9, %v1871_v1, %v1581_v9 }
 0x183   : > { %1096 = vrot.lane.b32.xlu1 %v597_v46, %s2851_s11  ;;  %2674 = vmatmul.mubr.msk.f32.gmra.mxu0 %vm1938_vm10, %v1904_v34  ;;  %v4401_v34 = vld [vmem:[#allocation28_spill] sm:$0xff] }
 0x184   : > { %1224 = vrot.lane.b32.xlu0 %v534_v12, %s2852_s14 }
 0x185   : > { %v1327_v31 = vpop.permute.xlu1 %1326  ;;  %v1075_v44 = vpop.permute.xlu0 %1074 }
 0x186   : > { %v1839_v53 = vsel %vm1834_vm8, %v1806_v14, %v1327_v31 }
 0x187   : > { %1604 = vrot.lane.b32.xlu1 %v534_v12, %s2855_s12  ;;  %v4402_v12 = vld [vmem:[#allocation7_spill] sm:$0xff] }
 0x188   : > { %1352 = vrot.lane.b32.xlu0 %v3348_v62, %s2853_s23  ;;  %v1708_v62 = vsel %vm1702_vm3, %v1675_v36, %v3415_v54 }
 0x189   : > { %v1455_v0 = vpop.permute.xlu1 %1454  ;;  %v1583_v38 = vpop.permute.xlu0 %1582  ;;  %v1741_v24 = vsel %vm1735_vm4, %v1708_v62, %v3543_v32 }
 0x18a   : > { %v1872_v29 = vsel %vm1867_vm7, %v1839_v53, %v1455_v0  ;;  %v538_v0 = vld [vmem:[#allocation2 + $0x112] sm:$0xff] }
 0x18b   : > { %1350 = vrot.lane.b32.xlu1 %v3330_v50, %s2853_s23  ;;  %v1905_v15 = vsel %vm1900_vm9, %v1872_v29, %v1583_v38  ;;  %v1774_v50 = vsel %vm1768_vm5, %v1741_v24, %v1073_v47  ;;  %v1742_v47 = vsel %vm1735_vm4, %v1709_v33, %v3537_v6 }
 0x18c   : > { %1098 = vrot.lane.b32.xlu0 %v503_v42, %s2851_s11  ;;  %2676 = vmatprep.mubr.msk.f32.mxu0 %vm1938_vm10, %v1905_v15  ;;  %v1807_v59 = vsel %vm1801_vm6, %v1774_v50, %v1201_v28  ;;  %v1775_v55 = vsel %vm1768_vm5, %v1742_v47, %v1075_v44  ;;  %v4404_v15 = vld [vmem:[#allocation36_spill] sm:$0xff] }
 0x18d   : > { %v1457_v49 = vpop.permute.xlu1 %1456  ;;  %v1203_v22 = vpop.permute.xlu0 %1202  ;;  %v1840_v54 = vsel %vm1834_vm8, %v1807_v59, %v1329_v35  ;;  %v1677_v35 = vsel %vm268_vm0, %v3264_v63, %v4402_v12 }
 0x18e   : > { %v1873_v11 = vsel %vm1867_vm7, %v1840_v54, %v1457_v49  ;;  %v1808_v20 = vsel %vm1801_vm6, %v1775_v55, %v1203_v22  ;;  %v3786_v22 = vld [vmem:[#allocation2 + $0x128] sm:$0xff] }
 0x18f   : > { %1478 = vrot.lane.b32.xlu1 %v503_v42, %s2854_s9  ;;  %v4403_v42 = vld [vmem:[#allocation6_spill] sm:$0xff]  ;;  %v602_v54 = vld [vmem:[#allocation2 + $0x121] sm:$0xff] }
 0x190   : > { %1606 = vrot.lane.b32.xlu0 %v630_v25, %s2855_s12  ;;  %v1678_v38 = vsel %vm268_vm0, %v3258_v61, %v4403_v42  ;;  %v605_v42 = vld [vmem:[#allocation2 + $0x141] sm:$0xff] }
 0x191   : > { %v1077_v51 = vpop.permute.xlu1 %1076  ;;  %v1205_v17 = vpop.permute.xlu0 %1204  ;;  %v1711_v36 = vsel %vm1702_vm3, %v1678_v38, %v4404_v15 }
 0x192   : > { %v1744_v62 = vsel %vm1735_vm4, %v1711_v36, %v3545_v52  ;;  %v4405_v52 = vld [vmem:[#allocation31_spill] sm:$0xff] }
 0x193   : > { %1480 = vrot.lane.b32.xlu1 %v599_v26, %s2854_s9 }
 0x194   : > { %1226 = vrot.lane.b32.xlu0 %v630_v25, %s2852_s14 }
 0x195   : > { %v1585_v32 = vpop.permute.xlu1 %1584  ;;  %v1333_v13 = vpop.permute.xlu0 %1332 }
 0x196   : > { %v1906_v18 = vsel %vm1900_vm9, %v1873_v11, %v1585_v32  ;;  %v4406_v11 = vld [vmem:[#allocation9_spill] sm:$0xff] }
 0x197   : > { %1100 = vrot.lane.b32.xlu1 %v599_v26, %s2851_s11  ;;  %2677 = vmatmul.mubr.msk.f32.gmra.mxu0 %vm1938_vm10, %v1906_v18  ;;  %v1679_v32 = vsel %vm268_vm0, %v3276_v19, %v4406_v11 }
 0x198   : > { %1228 = vrot.lane.b32.xlu0 %v536_v5, %s2852_s14 }
 0x199   : > { %v1331_v46 = vpop.permute.xlu1 %1330  ;;  %v1079_v28 = vpop.permute.xlu0 %1078 }
 0x19a   : > { %v1841_v1 = vsel %vm1834_vm8, %v1808_v20, %v1331_v46  ;;  %v1777_v25 = vsel %vm1768_vm5, %v1744_v62, %v1079_v28 }
 0x19b   : > { %1608 = vrot.lane.b32.xlu1 %v536_v5, %s2855_s12  ;;  %v1712_v5 = vsel %vm1702_vm3, %v1679_v32, %v3431_v60  ;;  %v634_v60 = vld [vmem:[#allocation2 + $0x122] sm:$0xff] }
 0x19c   : > { %1356 = vrot.lane.b32.xlu0 %v3360_v58, %s2853_s23  ;;  %v1710_v58 = vsel %vm1702_vm3, %v1677_v35, %v3423_v56  ;;  %v1745_v45 = vsel %vm1735_vm4, %v1712_v5, %v3559_v8  ;;  %v574_v5 = vld [vmem:[#allocation2 + $0x150] sm:$0xff] }
 0x19d   : > { %v1459_v48 = vpop.permute.xlu1 %1458  ;;  %v1587_v9 = vpop.permute.xlu0 %1586  ;;  %v1743_v41 = vsel %vm1735_vm4, %v1710_v58, %v3551_v40 }
 0x19e   : > { %v1874_v57 = vsel %vm1867_vm7, %v1841_v1, %v1459_v48  ;;  %v1776_v30 = vsel %vm1768_vm5, %v1743_v41, %v1077_v51  ;;  %v635_v48 = vld [vmem:[#allocation2 + $0x12a] sm:$0xff] }
 0x19f   : > { %1354 = vrot.lane.b32.xlu1 %v4401_v34, %s2853_s23  ;;  %v1907_v6 = vsel %vm1900_vm9, %v1874_v57, %v1587_v9  ;;  %v1809_v44 = vsel %vm1801_vm6, %v1776_v30, %v1205_v17  ;;  %v4408_v34 = vld [vmem:[#allocation37_spill] sm:$0xff] }
 0x1a0   : > { %1102 = vrot.lane.b32.xlu0 %v505_v27, %s2851_s11  ;;  %2679 = vmatprep.mubr.msk.f32.mxu0 %vm1938_vm10, %v1907_v6  ;;  %v1842_v56 = vsel %vm1834_vm8, %v1809_v44, %v1333_v13  ;;  %v603_v13 = vld [vmem:[#allocation2 + $0x129] sm:$0xff]  ;;  %v4409_v44 = vld [vmem:[#allocation11_spill] sm:$0xff] }
 0x1a1   : > { %v1461_v37 = vpop.permute.xlu1 %1460  ;;  %v1207_v31 = vpop.permute.xlu0 %1206 }
 0x1a2   : > { %v1875_v39 = vsel %vm1867_vm7, %v1842_v56, %v1461_v37  ;;  %v1810_v50 = vsel %vm1801_vm6, %v1777_v25, %v1207_v31  ;;  %v572_v37 = vld [vmem:[#allocation2 + $0x138] sm:$0xff] }
 0x1a3   : > { %1482 = vrot.lane.b32.xlu1 %v505_v27, %s2854_s9  ;;  %v4407_v27 = vld [vmem:[#allocation8_spill] sm:$0xff]  ;;  %v4410_v25 = vld [vmem:[#allocation10_spill] sm:$0xff] }
 0x1a4   : > { %1610 = vrot.lane.b32.xlu0 %v632_v3, %s2855_s12  ;;  %v1680_v9 = vsel %vm268_vm0, %v3270_v16, %v4407_v27 }
 0x1a5   : > { %v1081_v63 = vpop.permute.xlu1 %1080  ;;  %v1209_v14 = vpop.permute.xlu0 %1208  ;;  %v1713_v6 = vsel %vm1702_vm3, %v1680_v9, %v4408_v34  ;;  %v606_v34 = vld [vmem:[#allocation2 + $0x151] sm:$0xff] }
 0x1a6   : > { %v1778_v46 = vsel %vm1768_vm5, %v1745_v45, %v1081_v63  ;;  %v1746_v35 = vsel %vm1735_vm4, %v1713_v6, %v3553_v7  ;;  %v4412_v45 = vld [vmem:[#allocation13_spill] sm:$0xff] }
 0x1a7   : > { %1484 = vrot.lane.b32.xlu1 %v601_v10, %s2854_s9  ;;  %v1811_v47 = vsel %vm1801_vm6, %v1778_v46, %v1209_v14  ;;  %v1681_v14 = vsel %vm268_vm0, %v3288_v23, %v4409_v44 }
 0x1a8   : > { %1230 = vrot.lane.b32.xlu0 %v632_v3, %s2852_s14 }
 0x1a9   : > { %v1589_v40 = vpop.permute.xlu1 %1588  ;;  %v1337_v29 = vpop.permute.xlu0 %1336 }
 0x1aa   : > { %v1908_v53 = vsel %vm1900_vm9, %v1875_v39, %v1589_v40  ;;  %v1844_v28 = vsel %vm1834_vm8, %v1811_v47, %v1337_v29  ;;  %v1714_v39 = vsel %vm1702_vm3, %v1681_v14, %v3439_v2  ;;  %v604_v29 = vld [vmem:[#allocation2 + $0x139] sm:$0xff]  ;;  %v4414_v47 = vld [vmem:[#allocation40_spill] sm:$0xff] }
 0x1ab   : > { %1104 = vrot.lane.b32.xlu1 %v601_v10, %s2851_s11  ;;  %2680 = vmatmul.mubr.msk.f32.gmra.mxu0 %vm1938_vm10, %v1908_v53  ;;  %v573_v10 = vld [vmem:[#allocation2 + $0x140] sm:$0xff]  ;;  %v1747_v40 = vsel %vm1735_vm4, %v1714_v39, %v3567_v43  ;;  %v638_v39 = vld [vmem:[#allocation2 + $0x152] sm:$0xff] }
 0x1ac   : > { %1232 = vrot.lane.b32.xlu0 %v538_v0, %s2852_s14 }
 0x1ad   : > { %v1335_v49 = vpop.permute.xlu1 %1334  ;;  %v1083_v24 = vpop.permute.xlu0 %1082 }
 0x1ae   : > { %v1843_v61 = vsel %vm1834_vm8, %v1810_v50, %v1335_v49  ;;  %v1779_v58 = vsel %vm1768_vm5, %v1746_v35, %v1083_v24  ;;  %v1682_v24 = vsel %vm268_vm0, %v3282_v21, %v4410_v25  ;;  %v636_v50 = vld [vmem:[#allocation2 + $0x13a] sm:$0xff]  ;;  %v4423_v25 = vld [vmem:[#allocation61_spill] sm:$0xff] }
 0x1af   : > { %1612 = vrot.lane.b32.xlu1 %v538_v0, %s2855_s12 }
 0x1b0   : > { %1360 = vrot.lane.b32.xlu0 %v3786_v22, %s2853_s23 }
 0x1b1   : > { %v1463_v26 = vpop.permute.xlu1 %1462  ;;  %v1591_v59 = vpop.permute.xlu0 %1590 }
 0x1b2   : > { %v1876_v51 = vsel %vm1867_vm7, %v1843_v61, %v1463_v26  ;;  %v4411_v61 = vld [vmem:[#allocation38_spill] sm:$0xff] }
 0x1b3   : > { %1358 = vrot.lane.b32.xlu1 %v4405_v52, %s2853_s23  ;;  %v1909_v17 = vsel %vm1900_vm9, %v1876_v51, %v1591_v59  ;;  %v1715_v26 = vsel %vm1702_vm3, %v1682_v24, %v4411_v61  ;;  %v637_v52 = vld [vmem:[#allocation2 + $0x142] sm:$0xff] }
 0x1b4   : > { %980 = vrot.lane.b32.xlu0 %v3786_v22, %s2850_s10  ;;  %2682 = vmatprep.mubr.msk.f32.mxu0 %vm1938_vm10, %v1909_v17  ;;  %v1748_v59 = vsel %vm1735_vm4, %v1715_v26, %v3561_v4 }
 0x1b5   : > { %v1465_v18 = vpop.permute.xlu1 %1464  ;;  %v1211_v33 = vpop.permute.xlu0 %1210 }
 0x1b6   : > { %v1877_v20 = vsel %vm1867_vm7, %v1844_v28, %v1465_v18  ;;  %v1812_v41 = vsel %vm1801_vm6, %v1779_v58, %v1211_v33  ;;  %v4413_v33 = vld [vmem:[#allocation19_spill] sm:$0xff] }
 0x1b7   : > { %1486 = vrot.lane.b32.xlu1 %v602_v54, %s2854_s9  ;;  %v1683_v46 = vsel %vm268_vm0, %v4413_v33, %v4412_v45  ;;  %v575_v28 = vld [vmem:[#allocation2 + $0x158] sm:$0xff]  ;;  %v4425_v45 = vld [vmem:[#allocation41_spill] sm:$0xff] }
 0x1b8   : > { %1488 = vrot.lane.b32.xlu0 %v603_v13, %s2854_s9 }
 0x1b9   : > { %v1085_v19 = vpop.permute.xlu1 %1084  ;;  %v1213_v55 = vpop.permute.xlu0 %1212 }
 0x1ba   : > { %v1780_v0 = vsel %vm1768_vm5, %v1747_v40, %v1085_v19 }
 0x1bb   : > { %1106 = vrot.lane.b32.xlu1 %v602_v54, %s2851_s11  ;;  %v1813_v38 = vsel %vm1801_vm6, %v1780_v0, %v1213_v55  ;;  %v1716_v55 = vsel %vm1702_vm3, %v1683_v46, %v4414_v47 }
 0x1bc   : > { %1108 = vrot.lane.b32.xlu0 %v603_v13, %s2851_s11 }
 0x1bd   : > { %v1593_v8 = vpop.permute.xlu1 %1592  ;;  %v1341_v57 = vpop.permute.xlu0 %1340 }
 0x1be   : > { %v1910_v1 = vsel %vm1900_vm9, %v1877_v20, %v1593_v8  ;;  %v1846_v2 = vsel %vm1834_vm8, %v1813_v38, %v1341_v57  ;;  %v4420_v38 = vld [vmem:[#allocation15_spill] sm:$0xff] }
 0x1bf   : > { %1614 = vrot.lane.b32.xlu1 %v634_v60, %s2855_s12  ;;  %2683 = vmatmul.mubr.msk.f32.gmra.mxu0 %vm1938_vm10, %v1910_v1 }
 0x1c0   : > { %1616 = vrot.lane.b32.xlu0 %v635_v48, %s2855_s12 }
 0x1c1   : > { %v1339_v12 = vpop.permute.xlu1 %1338  ;;  %v1087_v3 = vpop.permute.xlu0 %1086 }
 0x1c2   : > { %v1845_v31 = vsel %vm1834_vm8, %v1812_v41, %v1339_v12  ;;  %v1781_v17 = vsel %vm1768_vm5, %v1748_v59, %v1087_v3  ;;  %v4416_v3 = vld [vmem:[#allocation12_spill] sm:$0xff]  ;;  %v4417_v41 = vld [vmem:[#allocation17_spill] sm:$0xff] }
 0x1c3   : > { %1234 = vrot.lane.b32.xlu1 %v634_v60, %s2852_s14  ;;  %v4415_v60 = vld [vmem:[#allocation59_spill] sm:$0xff] }
 0x1c4   : > { %1362 = vrot.lane.b32.xlu0 %v572_v37, %s2853_s23  ;;  %v1749_v20 = vsel %vm1735_vm4, %v1716_v55, %v4415_v60  ;;  %v609_v55 = vld [vmem:[#allocation2 + $0x171] sm:$0xff] }
 0x1c5   : > { %v1467_v16 = vpop.permute.xlu1 %1466  ;;  %v1595_v63 = vpop.permute.xlu0 %1594 }
 0x1c6   : > { %v1878_v30 = vsel %vm1867_vm7, %v1845_v31, %v1467_v16  ;;  %v1684_v31 = vsel %vm268_vm0, %v4417_v41, %v4416_v3  ;;  %v4418_v16 = vld [vmem:[#allocation39_spill] sm:$0xff]  ;;  %v641_v3 = vld [vmem:[#allocation2 + $0x172] sm:$0xff] }
 0x1c7   : > { %1236 = vrot.lane.b32.xlu1 %v635_v48, %s2852_s14  ;;  %v1911_v7 = vsel %vm1900_vm9, %v1878_v30, %v1595_v63  ;;  %v1717_v30 = vsel %vm1702_vm3, %v1684_v31, %v4418_v16  ;;  %v4419_v63 = vld [vmem:[#allocation58_spill] sm:$0xff]  ;;  %v4429_v41 = vld [vmem:[#allocation63_spill] sm:$0xff] }
 0x1c8   : > { %1364 = vrot.lane.b32.xlu0 %v573_v10, %s2853_s23  ;;  %2685 = vmatprep.mubr.msk.f32.mxu0 %vm1938_vm10, %v1911_v7  ;;  %v1750_v7 = vsel %vm1735_vm4, %v1717_v30, %v4419_v63  ;;  %v578_v63 = vld [vmem:[#allocation2 + $0x180] sm:$0xff] }
 0x1c9   : > { %v1469_v56 = vpop.permute.xlu1 %1468  ;;  %v1215_v53 = vpop.permute.xlu0 %1214 }
 0x1ca   : > { %v1879_v36 = vsel %vm1867_vm7, %v1846_v2, %v1469_v56  ;;  %v1814_v11 = vsel %vm1801_vm6, %v1781_v17, %v1215_v53 }
 0x1cb   : > { %982 = vrot.lane.b32.xlu1 %v572_v37, %s2850_s10  ;;  %v607_v37 = vld [vmem:[#allocation2 + $0x159] sm:$0xff] }
 0x1cc   : > { %984 = vrot.lane.b32.xlu0 %v573_v10, %s2850_s10 }
 0x1cd   : > { %v1089_v23 = vpop.permute.xlu1 %1088  ;;  %v1217_v15 = vpop.permute.xlu0 %1216 }
 0x1ce   : > { %v1782_v1 = vsel %vm1768_vm5, %v1749_v20, %v1089_v23 }
 0x1cf   : > { %1490 = vrot.lane.b32.xlu1 %v604_v29, %s2854_s9  ;;  %v1815_v57 = vsel %vm1801_vm6, %v1782_v1, %v1217_v15  ;;  %v4421_v15 = vld [vmem:[#allocation22_spill] sm:$0xff] }
 0x1d0   : > { %1492 = vrot.lane.b32.xlu0 %v605_v42, %s2854_s9  ;;  %v1685_v2 = vsel %vm268_vm0, %v4421_v15, %v4420_v38  ;;  %v4431_v38 = vld [vmem:[#allocation43_spill] sm:$0xff] }
 0x1d1   : > { %v1597_v43 = vpop.permute.xlu1 %1596  ;;  %v1345_v62 = vpop.permute.xlu0 %1344 }
 0x1d2   : > { %v1912_v49 = vsel %vm1900_vm9, %v1879_v36, %v1597_v43  ;;  %v1848_v9 = vsel %vm1834_vm8, %v1815_v57, %v1345_v62  ;;  %v4422_v43 = vld [vmem:[#allocation42_spill] sm:$0xff]  ;;  %v576_v62 = vld [vmem:[#allocation2 + $0x168] sm:$0xff] }
 0x1d3   : > { %1110 = vrot.lane.b32.xlu1 %v604_v29, %s2851_s11  ;;  %2686 = vmatmul.mubr.msk.f32.gmra.mxu0 %vm1938_vm10, %v1912_v49  ;;  %v639_v29 = vld [vmem:[#allocation2 + $0x15a] sm:$0xff]  ;;  %v1718_v49 = vsel %vm1702_vm3, %v1685_v2, %v4422_v43 }
 0x1d4   : > { %1112 = vrot.lane.b32.xlu0 %v605_v42, %s2851_s11  ;;  %v1751_v24 = vsel %vm1735_vm4, %v1718_v49, %v4423_v25 }
 0x1d5   : > { %v1343_v51 = vpop.permute.xlu1 %1342  ;;  %v1091_v54 = vpop.permute.xlu0 %1090 }
 0x1d6   : > { %v1847_v21 = vsel %vm1834_vm8, %v1814_v11, %v1343_v51  ;;  %v1783_v44 = vsel %vm1768_vm5, %v1750_v7, %v1091_v54  ;;  %v577_v51 = vld [vmem:[#allocation2 + $0x170] sm:$0xff] }
 0x1d7   : > { %1618 = vrot.lane.b32.xlu1 %v636_v50, %s2855_s12 }
 0x1d8   : > { %1620 = vrot.lane.b32.xlu0 %v637_v52, %s2855_s12 }
 0x1d9   : > { %v1471_v32 = vpop.permute.xlu1 %1470  ;;  %v1599_v13 = vpop.permute.xlu0 %1598 }
 0x1da   : > { %v1880_v18 = vsel %vm1867_vm7, %v1847_v21, %v1471_v32 }
 0x1db   : > { %1238 = vrot.lane.b32.xlu1 %v636_v50, %s2852_s14  ;;  %v1913_v4 = vsel %vm1900_vm9, %v1880_v18, %v1599_v13  ;;  %v2776_v18 = vld [vmem:[#allocation2 + $0xc0] sm:$0xff] }
 0x1dc   : > { %1366 = vrot.lane.b32.xlu0 %v574_v5, %s2853_s23  ;;  %2688 = vmatprep.mubr.msk.f32.mxu0 %vm1938_vm10, %v1913_v4  ;;  %v608_v4 = vld [vmem:[#allocation2 + $0x169] sm:$0xff] }
 0x1dd   : > { %v1473_v19 = vpop.permute.xlu1 %1472  ;;  %v1219_v8 = vpop.permute.xlu0 %1218 }
 0x1de   : > { %v1881_v6 = vsel %vm1867_vm7, %v1848_v9, %v1473_v19  ;;  %v1816_v56 = vsel %vm1801_vm6, %v1783_v44, %v1219_v8  ;;  %v4426_v19 = vld [vmem:[#allocation60_spill] sm:$0xff] }
 0x1df   : > { %1240 = vrot.lane.b32.xlu1 %v637_v52, %s2852_s14  ;;  %v640_v9 = vld [vmem:[#allocation2 + $0x16a] sm:$0xff] }
 0x1e0   : > { %1368 = vrot.lane.b32.xlu0 %v575_v28, %s2853_s23 }
 0x1e1   : > { %v1093_v48 = vpop.permute.xlu1 %1092 }
 0x1e2   : > { %v1221_v27 = vpop.permute.xlu0 %1220  ;;  %v1784_v61 = vsel %vm1768_vm5, %v1751_v24, %v1093_v48  ;;  %v610_v24 = vld [vmem:[#allocation2 + $0x181] sm:$0xff] }
 0x1e3   : > { %986 = vrot.lane.b32.xlu1 %v574_v5, %s2850_s10  ;;  %v1817_v59 = vsel %vm1801_vm6, %v1784_v61, %v1221_v27  ;;  %v4424_v5 = vld [vmem:[#allocation14_spill] sm:$0xff] }
 0x1e4   : > { %988 = vrot.lane.b32.xlu0 %v575_v28, %s2850_s10  ;;  %v1686_v13 = vsel %vm268_vm0, %v2776_v18, %v4424_v5  ;;  %v4435_v5 = vld [vmem:[#allocation65_spill] sm:$0xff] }
 0x1e5   : > { %v1601_v12 = vpop.permute.xlu1 %1600  ;;  %v1719_v33 = vsel %vm1702_vm3, %v1686_v13, %v4425_v45 }
 0x1e6   : > { %v1914_v35 = vsel %vm1900_vm9, %v1881_v6, %v1601_v12  ;;  %v1349_v58 = vpop.permute.xlu0 %1348  ;;  %v1752_v47 = vsel %vm1735_vm4, %v1719_v33, %v4426_v19  ;;  %v4427_v6 = vld [vmem:[#allocation18_spill] sm:$0xff]  ;;  %v642_v33 = vld [vmem:[#allocation2 + $0x182] sm:$0xff]  ;;  %v643_v19 = vld [vmem:[#allocation2 + $0x18a] sm:$0xff] }
 0x1e7   : > { %1494 = vrot.lane.b32.xlu1 %v606_v34, %s2854_s9  ;;  %2689 = vmatmul.mubr.msk.f32.gmra.mxu0 %vm1938_vm10, %v1914_v35  ;;  %v1850_v17 = vsel %vm1834_vm8, %v1817_v59, %v1349_v58 }
 0x1e8   : > { %1496 = vrot.lane.b32.xlu0 %v607_v37, %s2854_s9 }
 0x1e9   : > { %v1347_v10 = vpop.permute.xlu1 %1346 }
 0x1ea   : > { %v1095_v14 = vpop.permute.xlu0 %1094  ;;  %v1849_v40 = vsel %vm1834_vm8, %v1816_v56, %v1347_v10 }
 0x1eb   : > { %1114 = vrot.lane.b32.xlu1 %v606_v34, %s2851_s11  ;;  %v1785_v28 = vsel %vm1768_vm5, %v1752_v47, %v1095_v14  ;;  %v2777_v34 = vld [vmem:[#allocation2 + $0xc8] sm:$0xff] }
 0x1ec   : > { %1116 = vrot.lane.b32.xlu0 %v607_v37, %s2851_s11  ;;  %v1687_v12 = vsel %vm268_vm0, %v2777_v34, %v4427_v6  ;;  %v4428_v37 = vld [vmem:[#allocation44_spill] sm:$0xff] }
 0x1ed   : > { %v1475_v53 = vpop.permute.xlu1 %1474  ;;  %v1720_v58 = vsel %vm1702_vm3, %v1687_v12, %v4428_v37  ;;  %v581_v34 = vld [vmem:[#allocation2 + $0x1a0] sm:$0xff]  ;;  %v2780_v12 = vld [vmem:[#allocation2 + $0xf8] sm:$0xff] }
 0x1ee   : > { %v1882_v0 = vsel %vm1867_vm7, %v1849_v40, %v1475_v53  ;;  %v1603_v23 = vpop.permute.xlu0 %1602  ;;  %v1753_v31 = vsel %vm1735_vm4, %v1720_v58, %v4429_v41  ;;  %v579_v53 = vld [vmem:[#allocation2 + $0x188] sm:$0xff]  ;;  %v644_v58 = vld [vmem:[#allocation2 + $0x19a] sm:$0xff] }
 0x1ef   : > { %1622 = vrot.lane.b32.xlu1 %v638_v39, %s2855_s12  ;;  %v1915_v42 = vsel %vm1900_vm9, %v1882_v0, %v1603_v23  ;;  %v4430_v23 = vld [vmem:[#allocation16_spill] sm:$0xff] }
 0x1f0   : > { %1624 = vrot.lane.b32.xlu0 %v639_v29, %s2855_s12  ;;  %2691 = vmatprep.mubr.msk.f32.mxu0 %vm1938_vm10, %v1915_v42  ;;  %v4437_v41 = vld [vmem:[#allocation20_spill] sm:$0xff] }
 0x1f1   : > { %v1477_v36 = vpop.permute.xlu1 %1476 }
 0x1f2   : > { %v1223_v50 = vpop.permute.xlu0 %1222  ;;  %v1883_v54 = vsel %vm1867_vm7, %v1850_v17, %v1477_v36  ;;  %v4432_v36 = vld [vmem:[#allocation62_spill] sm:$0xff]  ;;  %v2779_v17 = vld [vmem:[#allocation2 + $0xe0] sm:$0xff] }
 0x1f3   : > { %1242 = vrot.lane.b32.xlu1 %v638_v39, %s2852_s14  ;;  %v1818_v20 = vsel %vm1801_vm6, %v1785_v28, %v1223_v50 }
 0x1f4   : > { %1370 = vrot.lane.b32.xlu0 %v576_v62, %s2853_s23 }
 0x1f5   : > { %v1097_v26 = vpop.permute.xlu1 %1096 }
 0x1f6   : > { %v1225_v52 = vpop.permute.xlu0 %1224  ;;  %v1786_v30 = vsel %vm1768_vm5, %v1753_v31, %v1097_v26 }
 0x1f7   : > { %1244 = vrot.lane.b32.xlu1 %v639_v29, %s2852_s14  ;;  %v1819_v7 = vsel %vm1801_vm6, %v1786_v30, %v1225_v52  ;;  %v2778_v29 = vld [vmem:[#allocation2 + $0xd8] sm:$0xff] }
 0x1f8   : > { %1372 = vrot.lane.b32.xlu0 %v577_v51, %s2853_s23  ;;  %v1688_v42 = vsel %vm268_vm0, %v2778_v29, %v4430_v23 }
 0x1f9   : > { %v1605_v11 = vpop.permute.xlu1 %1604  ;;  %v1721_v15 = vsel %vm1702_vm3, %v1688_v42, %v4431_v38 }
 0x1fa   : > { %v1916_v21 = vsel %vm1900_vm9, %v1883_v54, %v1605_v11  ;;  %v1353_v32 = vpop.permute.xlu0 %1352  ;;  %v1754_v43 = vsel %vm1735_vm4, %v1721_v15, %v4432_v36  ;;  %v4433_v54 = vld [vmem:[#allocation21_spill] sm:$0xff] }
 0x1fb   : > { %990 = vrot.lane.b32.xlu1 %v576_v62, %s2850_s10  ;;  %2692 = vmatmul.mubr.msk.f32.gmra.mxu0 %vm1938_vm10, %v1916_v21  ;;  %v1852_v14 = vsel %vm1834_vm8, %v1819_v7, %v1353_v32  ;;  %v1689_v11 = vsel %vm268_vm0, %v2779_v17, %v4433_v54  ;;  %v4434_v32 = vld [vmem:[#allocation46_spill] sm:$0xff] }
 0x1fc   : > { %992 = vrot.lane.b32.xlu0 %v577_v51, %s2850_s10  ;;  %v611_v51 = vld [vmem:[#allocation2 + $0x189] sm:$0xff]  ;;  %v1722_v18 = vsel %vm1702_vm3, %v1689_v11, %v4434_v32 }
 0x1fd   : > { %v1351_v46 = vpop.permute.xlu1 %1350  ;;  %v1755_v13 = vsel %vm1735_vm4, %v1722_v18, %v4435_v5 }
 0x1fe   : > { %v1099_v60 = vpop.permute.xlu0 %1098  ;;  %v1851_v8 = vsel %vm1834_vm8, %v1818_v20, %v1351_v46 }
 0x1ff   : > { %1498 = vrot.lane.b32.xlu1 %v608_v4, %s2854_s9  ;;  %v1787_v49 = vsel %vm1768_vm5, %v1754_v43, %v1099_v60  ;;  %v645_v43 = vld [vmem:[#allocation2 + $0x1a2] sm:$0xff] }
 0x200   : > { %1500 = vrot.lane.b32.xlu0 %v609_v55, %s2854_s9 }
 0x201   : > { %v1479_v1 = vpop.permute.xlu1 %1478 }
 0x202   : > { %v1884_v48 = vsel %vm1867_vm7, %v1851_v8, %v1479_v1  ;;  %v1607_v57 = vpop.permute.xlu0 %1606  ;;  %v580_v1 = vld [vmem:[#allocation2 + $0x198] sm:$0xff] }
 0x203   : > { %1118 = vrot.lane.b32.xlu1 %v608_v4, %s2851_s11  ;;  %v1917_v27 = vsel %vm1900_vm9, %v1884_v48, %v1607_v57 }
 0x204   : > { %1120 = vrot.lane.b32.xlu0 %v609_v55, %s2851_s11  ;;  %2694 = vmatprep.mubr.msk.f32.mxu1 %vm1938_vm10, %v1917_v27  ;;  %v612_v27 = vld [vmem:[#allocation2 + $0x199] sm:$0xff] }
 0x205   : > { %v1481_v35 = vpop.permute.xlu1 %1480 }
 0x206   : > { %v1227_v16 = vpop.permute.xlu0 %1226  ;;  %v1885_v56 = vsel %vm1867_vm7, %v1852_v14, %v1481_v35  ;;  %v4436_v35 = vld [vmem:[#allocation24_spill] sm:$0xff] }
 0x207   : > { %1626 = vrot.lane.b32.xlu1 %v640_v9, %s2855_s12  ;;  %v1820_v25 = vsel %vm1801_vm6, %v1787_v49, %v1227_v16  ;;  %v1691_v37 = vsel %vm268_vm0, %v2780_v12, %v4436_v35  ;;  %v4438_v16 = vld [vmem:[#allocation48_spill] sm:$0xff] }
 0x208   : > { %1628 = vrot.lane.b32.xlu0 %v641_v3, %s2855_s12  ;;  %v1724_v30 = vsel %vm1702_vm3, %v1691_v37, %v4438_v16 }
 0x209   : > { %v1101_v10 = vpop.permute.xlu1 %1100 }
 0x20a   : > { %v1229_v44 = vpop.permute.xlu0 %1228  ;;  %v1788_v45 = vsel %vm1768_vm5, %v1755_v13, %v1101_v10 }
 0x20b   : > { %1246 = vrot.lane.b32.xlu1 %v640_v9, %s2852_s14  ;;  %v1821_v47 = vsel %vm1801_vm6, %v1788_v45, %v1229_v44  ;;  %v4440_v44 = vld [vmem:[#allocation67_spill] sm:$0xff] }
 0x20c   : > { %1374 = vrot.lane.b32.xlu0 %v578_v63, %s2853_s23  ;;  %v1757_v14 = vsel %vm1735_vm4, %v1724_v30, %v4440_v44 }
 0x20d   : > { %v1609_v39 = vpop.permute.xlu1 %1608 }
 0x20e   : > { %v1918_v40 = vsel %vm1900_vm9, %v1885_v56, %v1609_v39  ;;  %v1357_v0 = vpop.permute.xlu0 %1356  ;;  %v613_v56 = vld [vmem:[#allocation2 + $0x1a1] sm:$0xff] }
 0x20f   : > { %1248 = vrot.lane.b32.xlu1 %v641_v3, %s2852_s14  ;;  %2695 = vmatmul.mubr.msk.f32.vlgmr.msra.gmra.mxu1 %vm1938_vm10, %v1918_v40  ;;  %v1854_v28 = vsel %vm1834_vm8, %v1821_v47, %v1357_v0  ;;  %v2781_v3 = vld [vmem:[#allocation2 + $0xf0] sm:$0xff]  ;;  %v4441_v39 = vld [vmem:[#allocation64_spill] sm:$0xff] }
 0x210   : > { %1376 = vrot.lane.b32.xlu0 %v579_v53, %s2853_s23  ;;  %v1690_v31 = vsel %vm268_vm0, %v2781_v3, %v4437_v41 }
 0x211   : > { %v1355_v2 = vpop.permute.xlu1 %1354 }
 0x212   : > { %v3967_v62 = vpop.permute.xlu0 %1102  ;;  %v1853_v50 = vsel %vm1834_vm8, %v1820_v25, %v1355_v2 }
 0x213   : > { %994 = vrot.lane.b32.xlu1 %v578_v63, %s2850_s10  ;;  %v4439_v63 = vld [vmem:[#allocation45_spill] sm:$0xff] }
 0x214   : > { %996 = vrot.lane.b32.xlu0 %v579_v53, %s2850_s10  ;;  %v1723_v7 = vsel %vm1702_vm3, %v1690_v31, %v4439_v63 }
 0x215   : > { %v1483_v61 = vpop.permute.xlu1 %1482  ;;  %v1756_v40 = vsel %vm1735_vm4, %v1723_v7, %v4441_v39 }
 0x216   : > { %v1886_v26 = vsel %vm1867_vm7, %v1853_v50, %v1483_v61  ;;  %v1611_v59 = vpop.permute.xlu0 %1610  ;;  %v1789_v29 = vsel %vm1768_vm5, %v1756_v40, %v3967_v62 }
 0x217   : > { %1502 = vrot.lane.b32.xlu1 %v610_v24, %s2854_s9  ;;  %v1919_v52 = vsel %vm1900_vm9, %v1886_v26, %v1611_v59 }
 0x218   : > { %1504 = vrot.lane.b32.xlu0 %v611_v51, %s2854_s9  ;;  %2697 = vmatprep.mubr.msk.f32.mxu1 %vm1938_vm10, %v1919_v52 }
 0x219   : > { %v1485_v21 = vpop.permute.xlu1 %1484 }
 0x21a   : > { %v1231_v4 = vpop.permute.xlu0 %1230  ;;  %v1887_v60 = vsel %vm1867_vm7, %v1854_v28, %v1485_v21  ;;  %v4443_v28 = vld [vmem:[#allocation47_spill] sm:$0xff] }
 0x21b   : > { %1122 = vrot.lane.b32.xlu1 %v610_v24, %s2851_s11  ;;  %v1822_v23 = vsel %vm1801_vm6, %v1789_v29, %v1231_v4 }
 0x21c   : > { %1124 = vrot.lane.b32.xlu0 %v611_v51, %s2851_s11  ;;  %s4020_s11 = scalar_lea.vmem %s4330_s4, %s2621_s29  ;;  %s2579_s29 = sshll.u32 %s223_s28, 1 }
 0x21d   : > { %v1105_v46 = vpop.permute.xlu1 %1104 }
 0x21e   : > { %v1233_v55 = vpop.permute.xlu0 %1232  ;;  %v1790_v53 = vsel %vm1768_vm5, %v1757_v14, %v1105_v46  ;;  %v2782_v46 = vld [vmem:[#allocation2 + $0x108] sm:$0xff] }
 0x21f   : > { %1630 = vrot.lane.b32.xlu1 %v642_v33, %s2855_s12  ;;  %v1823_v15 = vsel %vm1801_vm6, %v1790_v53, %v1233_v55 }
 0x220   : > { %1632 = vrot.lane.b32.xlu0 %v643_v19, %s2855_s12 }
 0x221   : > { %v1613_v20 = vpop.permute.xlu1 %1612 }
 0x222   : > { %v1920_v8 = vsel %vm1900_vm9, %v1887_v60, %v1613_v20  ;;  %v1361_v48 = vpop.permute.xlu0 %1360  ;;  %v2783_v20 = vld [vmem:[#allocation2 + $0x110] sm:$0xff] }
 0x223   : > { %1250 = vrot.lane.b32.xlu1 %v642_v33, %s2852_s14  ;;  %2698 = vmatmul.mubr.msk.f32.gmra.mxu1 %vm1938_vm10, %v1920_v8  ;;  %v1856_v49 = vsel %vm1834_vm8, %v1823_v15, %v1361_v48  ;;  %v4444_v8 = vld [vmem:[#allocation26_spill] sm:$0xff] }
 0x224   : > { %1378 = vrot.lane.b32.xlu0 %v580_v1, %s2853_s23  ;;  %v1693_v1 = vsel %vm268_vm0, %v2783_v20, %v4444_v8  ;;  %v4445_v48 = vld [vmem:[#allocation66_spill] sm:$0xff] }
 0x225   : > { %v1359_v57 = vpop.permute.xlu1 %1358 }
 0x226   : > { %v3996_v9 = vpop.permute.xlu0 %980  ;;  %v1855_v2 = vsel %vm1834_vm8, %v1822_v23, %v1359_v57 }
 0x227   : > { %1252 = vrot.lane.b32.xlu1 %v643_v19, %s2852_s14  ;;  %v4442_v19 = vld [vmem:[#allocation23_spill] sm:$0xff]  ;;  %s225_s14 = scalar_lea.vmem [#allocation3], %s2579_s29 }
 0x228   : > { %1506 = vrot.lane.b32.xlu0 %v612_v27, %s2854_s9  ;;  %v1692_v47 = vsel %vm268_vm0, %v2782_v46, %v4442_v19  ;;  %s2491_s15 = sshll.u32 %s225_s14, 4  ;;  %s2492_s15 = int_to_ptr.vmem [resolvable:$true] %s2491_s15 }
 0x229   : > { %v1487_v6 = vpop.permute.xlu1 %1486  ;;  %v1725_v60 = vsel %vm1702_vm3, %v1692_v47, %v4443_v28  ;;  %v4450_v47 = vld [vmem:[#allocation52_spill] sm:$0xff]  ;;  %s2785_s24 = scalar_lea.vmem %s2492_s15, 32  ;;  %p2792_p0 = scmp.lt.s32.totalorder %s2492_s15, %s2790_s2 }
 0x22a   : > { %v1489_v10 = vpop.permute.xlu0 %1488  ;;  %v1888_v25 = vsel %vm1867_vm7, %v1855_v2, %v1487_v6  ;;  %v1758_v57 = vsel %vm1735_vm4, %v1725_v60, %v4445_v48  ;;  %v4446_v6 = vld [vmem:[#allocation50_spill] sm:$0xff]  ;;  %p2786_p11 = scmp.ne.s32.totalorder %s2492_s15, %s2785_s24  ;;  %p2793_p1 = scmp.lt.s32.totalorder %s2791_s6, %s2785_s24 }
 0x22b   : > { %1380 = vrot.lane.b32.xlu1 %v581_v34, %s2853_s23  ;;  %v1889_v59 = vsel %vm1867_vm7, %v1856_v49, %v1489_v10  ;;  %v1726_v12 = vsel %vm1702_vm3, %v1693_v1, %v4446_v6  ;;  %s2475_s23 = scalar_lea.sflag [#allocation4], %s223_s28 }
 0x22c   : > { %1634 = vrot.lane.b32.xlu0 %v644_v58, %s2855_s12  ;;  %v1759_v37 = vsel %vm1735_vm4, %v1726_v12, %v3996_v9  ;;  %p2787_p12 = pnand %p2786_p11, %p2925_p5  ;;  %p2794_p2 = por %p2793_p1, %p2792_p0 }
 0x22d   : > { %v1107_v0 = vpop.permute.xlu1 %1106 }
 0x22e   : > { %v1109_v42 = vpop.permute.xlu0 %1108  ;;  %v1791_v35 = vsel %vm1768_vm5, %v1758_v57, %v1107_v0  ;;  %p2788_p13 = pneg %p2787_p12 }
 0x22f   : > { %v2672_v38 = vpop.f32.mrf.mxu0  ;;  %1508 = vrot.lane.b32.xlu1 %v613_v56, %s2854_s9  ;;  %v1792_v31 = vsel %vm1768_vm5, %v1759_v37, %v1109_v42 }
 0x230   : > { %2265 = vst.msk [vmem:[%s4020_s11 + $0x8] sm:$0xff] %vm1702_vm3, %v2672_v38  ;;  %v2368_v36 = vmul.f32 %v2672_v38, %v2672_v38  ;;  %v2297_v50 = vsel %vm1702_vm3, %v2672_v38, 0.0  ;;  %p2795_p3 = pnand %p2794_p2, %p2788_p13 }
 0x231   : > { %v2105_v24 = vpop.f32.mrf.mxu0  ;;  %v1615_v62 = vpop.permute.xlu1 %1614 }
 0x232   : > { %2264 = vst.msk [vmem:[%s4020_s11] sm:$0xff] %vm1702_vm3, %v2105_v24  ;;  %v2296_v61 = vsel %vm1702_vm3, %v2105_v24, 0.0  ;;  %v2367_v26 = vmul.f32 %v2105_v24, %v2105_v24  ;;  %v1921_v51 = vsel %vm1900_vm9, %v1888_v25, %v1615_v62  ;;  %v1617_v17 = vpop.permute.xlu0 %1616  ;;  %v2400_v54 = vsel %vm1702_vm3, %v2368_v36, 0.0 }
 0x233   : > { %v2298_v52 = vadd.f32 %v2297_v50, %v2296_v61  ;;  %1636 = vrot.lane.b32.xlu1 %v645_v43, %s2855_s12  ;;  %2700 = vmatprep.mubr.msk.f32.mxu1 %vm1938_vm10, %v1921_v51  ;;  %v1922_v21 = vsel %vm1900_vm9, %v1889_v59, %v1617_v17  ;;  %v4447_v51 = vld [vmem:[#allocation25_spill] sm:$0xff] }
 0x234   : > { %v2399_v11 = vsel %vm1702_vm3, %v2367_v26, 0.0  ;;  %2701 = vmatmul.mubr.msk.f32.gmra.mxu1 %vm1938_vm10, %v1922_v21  ;;  %v2784_v26 = vld [vmem:[#allocation2 + $0x120] sm:$0xff] }
 0x235   : > { %v2401_v32 = vadd.f32 %v2400_v54, %v2399_v11  ;;  %v1235_v18 = vpop.permute.xlu1 %1234  ;;  %v1694_v59 = vsel %vm268_vm0, %v2784_v26, %v4447_v51  ;;  %v4448_v54 = vld [vmem:[#allocation49_spill] sm:$0xff]  ;;  %v4453_v26 = vld [vmem:[#allocation32_spill] sm:$0xff] }
 0x236   : > { %v1363_v5 = vpop.permute.xlu0 %1362  ;;  %v1824_v58 = vsel %vm1801_vm6, %v1791_v35, %v1235_v18  ;;  %v1727_v11 = vsel %vm1702_vm3, %v1694_v59, %v4448_v54  ;;  %v4454_v54 = vld [vmem:[#allocation54_spill] sm:$0xff] }
 0x237   : > { %v1857_v14 = vsel %vm1834_vm8, %v1824_v58, %v1363_v5  ;;  %v4449_v5 = vld [vmem:[#allocation29_spill] sm:$0xff] }
 0x239   : > { %v1237_v13 = vpop.permute.xlu1 %1236 }
 0x23a   : > { %v1365_v4 = vpop.permute.xlu0 %1364  ;;  %v1825_v63 = vsel %vm1801_vm6, %v1792_v31, %v1237_v13  ;;  %v1695_v13 = vsel %vm268_vm0, %v3786_v22, %v4449_v5 }
 0x23b   : > { %v1858_v29 = vsel %vm1834_vm8, %v1825_v63, %v1365_v4 }
 0x23d   : > { %v983_v45 = vpop.permute.xlu1 %982 }
 0x23e   : > { %v4044_v33 = vpop.permute.xlu0 %984  ;;  %v1760_v4 = vsel %vm1735_vm4, %v1727_v11, %v983_v45 }
 0x241   : > { %v1491_v55 = vpop.permute.xlu1 %1490 }
 0x242   : > { %v1493_v27 = vpop.permute.xlu0 %1492  ;;  %v1890_v39 = vsel %vm1867_vm7, %v1857_v14, %v1491_v55  ;;  %v1728_v55 = vsel %vm1702_vm3, %v1695_v13, %v4450_v47 }
 0x243   : > { %v2675_v34 = vpop.f32.mrf.mxu0  ;;  %v1891_v38 = vsel %vm1867_vm7, %v1858_v29, %v1493_v27  ;;  %v1761_v8 = vsel %vm1735_vm4, %v1728_v55, %v4044_v33 }
 0x244   : > { %2267 = vst.msk [vmem:[%s4020_s11 + $0x18] sm:$0xff] %vm1702_vm3, %v2675_v34  ;;  %v2370_v16 = vmul.f32 %v2675_v34, %v2675_v34  ;;  %v2301_v9 = vsel %vm1702_vm3, %v2675_v34, 0.0 }
 0x245   : > { %v1111_v3 = vpop.permute.xlu1 %1110  ;;  %v2115_v41 = vpop.f32.mrf.mxu0 }
 0x246   : > { %2266 = vst.msk [vmem:[%s4020_s11 + $0x10] sm:$0xff] %vm1702_vm3, %v2115_v41  ;;  %v2299_v30 = vsel %vm1702_vm3, %v2115_v41, 0.0  ;;  %v2369_v10 = vmul.f32 %v2115_v41, %v2115_v41  ;;  %v1113_v44 = vpop.permute.xlu0 %1112  ;;  %v2404_v23 = vsel %vm1702_vm3, %v2370_v16, 0.0  ;;  %v1793_v28 = vsel %vm1768_vm5, %v1760_v4, %v1111_v3 }
 0x247   : > { %v2300_v7 = vadd.f32 %v2299_v30, %v2298_v52  ;;  %v1794_v45 = vsel %vm1768_vm5, %v1761_v8, %v1113_v44 }
 0x248   : > { %v2402_v56 = vsel %vm1702_vm3, %v2369_v10, 0.0 }
 0x249   : > { %v2403_v40 = vadd.f32 %v2402_v56, %v2401_v32  ;;  %v1619_v53 = vpop.permute.xlu1 %1618  ;;  %v2302_v0 = vadd.f32 %v2301_v9, %v2300_v7  ;;  %v383_v56 = vld [vmem:[#allocation2 + $0x138] sm:$0xff] }
 0x24a   : > { %v1923_v42 = vsel %vm1900_vm9, %v1890_v39, %v1619_v53  ;;  %v1621_v15 = vpop.permute.xlu0 %1620 }
 0x24b   : > { %2703 = vmatprep.mubr.msk.f32.mxu1 %vm1938_vm10, %v1923_v42  ;;  %v2405_v2 = vadd.f32 %v2404_v23, %v2403_v40  ;;  %v1924_v36 = vsel %vm1900_vm9, %v1891_v38, %v1621_v15  ;;  %v384_v23 = vld [vmem:[#allocation2 + $0x140] sm:$0xff] }
 0x24c   : > { %2704 = vmatmul.mubr.msk.f32.gmra.mxu1 %vm1938_vm10, %v1924_v36  ;;  %v4451_v15 = vld [vmem:[#allocation27_spill] sm:$0xff]  ;;  %v1697_v51 = vsel %vm268_vm0, %v384_v23, %v4453_v26  ;;  %v4458_v23 = vld [vmem:[#allocation56_spill] sm:$0xff] }
 0x24d   : > { %v1239_v43 = vpop.permute.xlu1 %1238  ;;  %v1730_v11 = vsel %vm1702_vm3, %v1697_v51, %v4454_v54 }
 0x24e   : > { %v1367_v49 = vpop.permute.xlu0 %1366  ;;  %v1826_v1 = vsel %vm1801_vm6, %v1793_v28, %v1239_v43 }
 0x24f   : > { %v1859_v35 = vsel %vm1834_vm8, %v1826_v1, %v1367_v49 }
 0x251   : > { %v1241_v25 = vpop.permute.xlu1 %1240 }
 0x252   : > { %v1369_v24 = vpop.permute.xlu0 %1368  ;;  %v1827_v34 = vsel %vm1801_vm6, %v1794_v45, %v1241_v25  ;;  %v4452_v25 = vld [vmem:[#allocation51_spill] sm:$0xff] }
 0x253   : > { %v1860_v33 = vsel %vm1834_vm8, %v1827_v34, %v1369_v24 }
 0x255   : > { %v4078_v62 = vpop.permute.xlu1 %986 }
 0x256   : > { %v4080_v50 = vpop.permute.xlu0 %988 }
 0x257   : > { %v2678_v61 = vpop.f32.mrf.mxu0 }
 0x258   : > { %2269 = vst.msk [vmem:[%s4020_s11 + $0x28] sm:$0xff] %vm1702_vm3, %v2678_v61  ;;  %v2372_v21 = vmul.f32 %v2678_v61, %v2678_v61  ;;  %v2305_v60 = vsel %vm1702_vm3, %v2678_v61, 0.0 }
 0x259   : > { %v1495_v52 = vpop.permute.xlu1 %1494  ;;  %v2125_v17 = vpop.f32.mrf.mxu0 }
 0x25a   : > { %2268 = vst.msk [vmem:[%s4020_s11 + $0x20] sm:$0xff] %vm1702_vm3, %v2125_v17  ;;  %v2303_v32 = vsel %vm1702_vm3, %v2125_v17, 0.0  ;;  %v2371_v18 = vmul.f32 %v2125_v17, %v2125_v17  ;;  %v1497_v19 = vpop.permute.xlu0 %1496  ;;  %v2408_v27 = vsel %vm1702_vm3, %v2372_v21, 0.0  ;;  %v1892_v37 = vsel %vm1867_vm7, %v1859_v35, %v1495_v52 }
 0x25b   : > { %v2304_v46 = vadd.f32 %v2303_v32, %v2302_v0  ;;  %v1893_v41 = vsel %vm1867_vm7, %v1860_v33, %v1497_v19  ;;  %v1763_v32 = vsel %vm1735_vm4, %v1730_v11, %v4080_v50 }
 0x25c   : > { %v2406_v20 = vsel %vm1702_vm3, %v2371_v18, 0.0 }
 0x25d   : > { %v2407_v48 = vadd.f32 %v2406_v20, %v2405_v2  ;;  %v1115_v22 = vpop.permute.xlu1 %1114  ;;  %v2306_v57 = vadd.f32 %v2305_v60, %v2304_v46  ;;  %v1696_v2 = vsel %vm268_vm0, %v383_v56, %v4451_v15 }
 0x25e   : > { %v1117_v6 = vpop.permute.xlu0 %1116  ;;  %v1729_v24 = vsel %vm1702_vm3, %v1696_v2, %v4452_v25 }
 0x25f   : > { %v2409_v12 = vadd.f32 %v2408_v27, %v2407_v48  ;;  %v1762_v59 = vsel %vm1735_vm4, %v1729_v24, %v4078_v62  ;;  %v1796_v13 = vsel %vm1768_vm5, %v1763_v32, %v1117_v6 }
 0x260   : > { %v1795_v21 = vsel %vm1768_vm5, %v1762_v59, %v1115_v22 }
 0x261   : > { %v1623_v58 = vpop.permute.xlu1 %1622 }
 0x262   : > { %v1925_v3 = vsel %vm1900_vm9, %v1892_v37, %v1623_v58  ;;  %v1625_v31 = vpop.permute.xlu0 %1624 }
 0x263   : > { %2706 = vmatprep.mubr.msk.f32.mxu1 %vm1938_vm10, %v1925_v3  ;;  %v1926_v16 = vsel %vm1900_vm9, %v1893_v41, %v1625_v31  ;;  %v385_v41 = vld [vmem:[#allocation2 + $0x150] sm:$0xff] }
 0x264   : > { %2707 = vmatmul.mubr.msk.f32.gmra.mxu1 %vm1938_vm10, %v1926_v16 }
 0x265   : > { %v1243_v30 = vpop.permute.xlu1 %1242 }
 0x266   : > { %v1371_v10 = vpop.permute.xlu0 %1370  ;;  %v1828_v18 = vsel %vm1801_vm6, %v1795_v21, %v1243_v30 }
 0x267   : > { %v1861_v62 = vsel %vm1834_vm8, %v1828_v18, %v1371_v10  ;;  %v386_v10 = vld [vmem:[#allocation2 + $0x158] sm:$0xff] }
 0x269   : > { %v1245_v63 = vpop.permute.xlu1 %1244 }
 0x26a   : > { %v1373_v7 = vpop.permute.xlu0 %1372  ;;  %v1829_v4 = vsel %vm1801_vm6, %v1796_v13, %v1245_v63  ;;  %v4455_v63 = vld [vmem:[#allocation30_spill] sm:$0xff]  ;;  %v4459_v13 = vld [vmem:[#allocation33_spill] sm:$0xff] }
 0x26b   : > { %v2681_v44 = vpop.f32.mrf.mxu0  ;;  %v1862_v55 = vsel %vm1834_vm8, %v1829_v4, %v1373_v7  ;;  %v1698_v7 = vsel %vm268_vm0, %v385_v41, %v4455_v63 }
 0x26c   : > { %2271 = vst.msk [vmem:[%s4020_s11 + $0x38] sm:$0xff] %vm1702_vm3, %v2681_v44  ;;  %v2374_v39 = vmul.f32 %v2681_v44, %v2681_v44  ;;  %v2309_v42 = vsel %vm1702_vm3, %v2681_v44, 0.0 }
 0x26d   : > { %v4116_v14 = vpop.permute.xlu1 %990  ;;  %v2135_v9 = vpop.f32.mrf.mxu0 }
 0x26e   : > { %2270 = vst.msk [vmem:[%s4020_s11 + $0x30] sm:$0xff] %vm1702_vm3, %v2135_v9  ;;  %v2307_v40 = vsel %vm1702_vm3, %v2135_v9, 0.0  ;;  %v2373_v53 = vmul.f32 %v2135_v9, %v2135_v9  ;;  %v4121_v29 = vpop.permute.xlu0 %992  ;;  %v2412_v61 = vsel %vm1702_vm3, %v2374_v39, 0.0  ;;  %v4456_v9 = vld [vmem:[#allocation53_spill] sm:$0xff]  ;;  %v4457_v39 = vld [vmem:[#allocation34_spill] sm:$0xff] }
 0x26f   : > { %v2308_v0 = vadd.f32 %v2307_v40, %v2306_v57  ;;  %v1731_v56 = vsel %vm1702_vm3, %v1698_v7, %v4456_v9  ;;  %v1699_v40 = vsel %vm268_vm0, %v386_v10, %v4457_v39 }
 0x270   : > { %v2410_v38 = vsel %vm1702_vm3, %v2373_v53, 0.0  ;;  %v1764_v53 = vsel %vm1735_vm4, %v1731_v56, %v4116_v14 }
 0x271   : > { %v2411_v36 = vadd.f32 %v2410_v38, %v2409_v12  ;;  %v1499_v43 = vpop.permute.xlu1 %1498  ;;  %v2310_v49 = vadd.f32 %v2309_v42, %v2308_v0  ;;  %v1732_v42 = vsel %vm1702_vm3, %v1699_v40, %v4458_v23 }
 0x272   : > { %v1501_v52 = vpop.permute.xlu0 %1500  ;;  %v1894_v19 = vsel %vm1867_vm7, %v1861_v62, %v1499_v43  ;;  %v1765_v15 = vsel %vm1735_vm4, %v1732_v42, %v4121_v29 }
 0x273   : > { %v2413_v17 = vadd.f32 %v2412_v61, %v2411_v36  ;;  %v1895_v50 = vsel %vm1867_vm7, %v1862_v55, %v1501_v52 }
 0x275   : > { %v1119_v5 = vpop.permute.xlu1 %1118 }
 0x276   : > { %v1121_v46 = vpop.permute.xlu0 %1120  ;;  %v1797_v38 = vsel %vm1768_vm5, %v1764_v53, %v1119_v5 }
 0x277   : > { %v1798_v43 = vsel %vm1768_vm5, %v1765_v15, %v1121_v46 }
 0x279   : > { %v1627_v47 = vpop.permute.xlu1 %1626 }
 0x27a   : > { %v1927_v28 = vsel %vm1900_vm9, %v1894_v19, %v1627_v47  ;;  %v1629_v60 = vpop.permute.xlu0 %1628  ;;  %v4460_v19 = vld [vmem:[#allocation55_spill] sm:$0xff] }
 0x27b   : > { %2709 = vmatprep.mubr.msk.f32.mxu1 %vm1938_vm10, %v1927_v28  ;;  %v1928_v20 = vsel %vm1900_vm9, %v1895_v50, %v1629_v60 }
 0x27c   : > { %2710 = vmatmul.mubr.msk.f32.gmra.mxu1 %vm1938_vm10, %v1928_v20 }
 0x27d   : > { %v1247_v8 = vpop.permute.xlu1 %1246 }
 0x27e   : > { %v1375_v1 = vpop.permute.xlu0 %1374  ;;  %v1830_v2 = vsel %vm1801_vm6, %v1797_v38, %v1247_v8 }
 0x27f   : > { %v2684_v48 = vpop.f32.mrf.mxu0  ;;  %v1863_v14 = vsel %vm1834_vm8, %v1830_v2, %v1375_v1 }
 0x280   : > { %2273 = vst.msk [vmem:[%s4020_s11 + $0x48] sm:$0xff] %vm1702_vm3, %v2684_v48  ;;  %v2376_v45 = vmul.f32 %v2684_v48, %v2684_v48  ;;  %v2313_v35 = vsel %vm1702_vm3, %v2684_v48, 0.0 }
 0x281   : > { %v1249_v22 = vpop.permute.xlu1 %1248  ;;  %v2145_v57 = vpop.f32.mrf.mxu0 }
 0x282   : > { %2272 = vst.msk [vmem:[%s4020_s11 + $0x40] sm:$0xff] %vm1702_vm3, %v2145_v57  ;;  %v2311_v27 = vsel %vm1702_vm3, %v2145_v57, 0.0  ;;  %v2375_v34 = vmul.f32 %v2145_v57, %v2145_v57  ;;  %v1377_v12 = vpop.permute.xlu0 %1376  ;;  %v2416_v31 = vsel %vm1702_vm3, %v2376_v45, 0.0 }
 0x283   : > { %v2312_v6 = vadd.f32 %v2311_v27, %v2310_v49  ;;  %v1831_v49 = vsel %vm1801_vm6, %v1798_v43, %v1249_v22  ;;  %v388_v27 = vld [vmem:[#allocation2 + $0x170] sm:$0xff] }
 0x284   : > { %v2414_v37 = vsel %vm1702_vm3, %v2375_v34, 0.0  ;;  %v1864_v26 = vsel %vm1834_vm8, %v1831_v49, %v1377_v12  ;;  %v4461_v12 = vld [vmem:[#allocation35_spill] sm:$0xff] }
 0x285   : > { %v2415_v58 = vadd.f32 %v2414_v37, %v2413_v17  ;;  %v995_v33 = vpop.permute.xlu1 %994  ;;  %v2314_v3 = vadd.f32 %v2313_v35, %v2312_v6  ;;  %v387_v17 = vld [vmem:[#allocation2 + $0x168] sm:$0xff]  ;;  %v1701_v35 = vsel %vm268_vm0, %v388_v27, %v4461_v12 }
 0x286   : > { %v997_v16 = vpop.permute.xlu0 %996  ;;  %v1700_v4 = vsel %vm268_vm0, %v387_v17, %v4459_v13 }
 0x287   : > { %v2417_v30 = vadd.f32 %v2416_v31, %v2415_v58  ;;  %v1733_v47 = vsel %vm1702_vm3, %v1700_v4, %v4460_v19 }
 0x288   : > { %v1766_v50 = vsel %vm1735_vm4, %v1733_v47, %v995_v33  ;;  %v4462_v33 = vld [vmem:[#allocation57_spill] sm:$0xff] }
 0x289   : > { %v1503_v44 = vpop.permute.xlu1 %1502 }
 0x28a   : > { %v1505_v0 = vpop.permute.xlu0 %1504  ;;  %v1896_v24 = vsel %vm1867_vm7, %v1863_v14, %v1503_v44 }
 0x28b   : > { %v1897_v29 = vsel %vm1867_vm7, %v1864_v26, %v1505_v0 }
 0x28d   : > { %v1123_v36 = vpop.permute.xlu1 %1122 }
 0x28e   : > { %v1125_v25 = vpop.permute.xlu0 %1124  ;;  %v1799_v1 = vsel %vm1768_vm5, %v1766_v50, %v1123_v36 }
 0x291   : > { %v1631_v61 = vpop.permute.xlu1 %1630 }
 0x292   : > { %v1929_v51 = vsel %vm1900_vm9, %v1896_v24, %v1631_v61  ;;  %v1633_v59 = vpop.permute.xlu0 %1632 }
 0x293   : > { %v2687_v52 = vpop.f32.mrf.mxu0  ;;  %2712 = vmatprep.mubr.msk.f32.mxu1 %vm1938_vm10, %v1929_v51  ;;  %v1930_v54 = vsel %vm1900_vm9, %v1897_v29, %v1633_v59 }
 0x294   : > { %2275 = vst.msk [vmem:[%s4020_s11 + $0x58] sm:$0xff] %vm1702_vm3, %v2687_v52  ;;  %2713 = vmatmul.mubr.msk.f32.gmra.mxu1 %vm1938_vm10, %v1930_v54  ;;  %v2378_v32 = vmul.f32 %v2687_v52, %v2687_v52  ;;  %v2317_v55 = vsel %vm1702_vm3, %v2687_v52, 0.0 }
 0x295   : > { %v1251_v11 = vpop.permute.xlu1 %1250  ;;  %v2155_v21 = vpop.f32.mrf.mxu0 }
 0x296   : > { %2274 = vst.msk [vmem:[%s4020_s11 + $0x50] sm:$0xff] %vm1702_vm3, %v2155_v21  ;;  %v2315_v18 = vsel %vm1702_vm3, %v2155_v21, 0.0  ;;  %v2377_v5 = vmul.f32 %v2155_v21, %v2155_v21  ;;  %v1379_v62 = vpop.permute.xlu0 %1378  ;;  %v2420_v48 = vsel %vm1702_vm3, %v2378_v32, 0.0  ;;  %v1832_v22 = vsel %vm1801_vm6, %v1799_v1, %v1251_v11 }
 0x297   : > { %v2316_v46 = vadd.f32 %v2315_v18, %v2314_v3  ;;  %v1865_v6 = vsel %vm1834_vm8, %v1832_v22, %v1379_v62  ;;  %v1734_v3 = vsel %vm1702_vm3, %v1701_v35, %v4462_v33 }
 0x298   : > { %v2418_v28 = vsel %vm1702_vm3, %v2377_v5, 0.0  ;;  %v1767_v31 = vsel %vm1735_vm4, %v1734_v3, %v997_v16 }
 0x299   : > { %v2419_v60 = vadd.f32 %v2418_v28, %v2417_v30  ;;  %v1253_v20 = vpop.permute.xlu1 %1252  ;;  %v2318_v8 = vadd.f32 %v2317_v55, %v2316_v46  ;;  %v1800_v10 = vsel %vm1768_vm5, %v1767_v31, %v1125_v25 }
 0x29a   : > { %v1507_v57 = vpop.permute.xlu0 %1506  ;;  %v1833_v63 = vsel %vm1801_vm6, %v1800_v10, %v1253_v20 }
 0x29b   : > { %v2421_v45 = vadd.f32 %v2420_v48, %v2419_v60  ;;  %v1898_v37 = vsel %vm1867_vm7, %v1865_v6, %v1507_v57 }
 0x29d   : > { %v1381_v34 = vpop.permute.xlu1 %1380 }
 0x29e   : > { %v1635_v58 = vpop.permute.xlu0 %1634  ;;  %v1866_v7 = vsel %vm1834_vm8, %v1833_v63, %v1381_v34 }
 0x29f   : > { %v1931_v41 = vsel %vm1900_vm9, %v1898_v37, %v1635_v58 }
 0x2a0   : > { %2715 = vmatprep.mubr.msk.f32.mxu1 %vm1938_vm10, %v1931_v41 }
 0x2a1   : > { %v1509_v30 = vpop.permute.xlu1 %1508 }
 0x2a2   : > { %v1899_v44 = vsel %vm1867_vm7, %v1866_v7, %v1509_v30 }
 0x2a5   : > { %v1637_v9 = vpop.permute.xlu1 %1636 }
 0x2a6   : > { %v1932_v56 = vsel %vm1900_vm9, %v1899_v44, %v1637_v9 }
 0x2a7   : > { %v2690_v39 = vpop.f32.mrf.mxu0  ;;  %2716 = vmatmul.mubr.msk.f32.gmra.mxu1 %vm1938_vm10, %v1932_v56 }
 0x2a8   : > { %2277 = vst.msk [vmem:[%s4020_s11 + $0x68] sm:$0xff] %vm1702_vm3, %v2690_v39  ;;  %v2380_v40 = vmul.f32 %v2690_v39, %v2690_v39  ;;  %v2321_v42 = vsel %vm1702_vm3, %v2690_v39, 0.0 }
 0x2a9   : > { %v2165_v16 = vpop.f32.mrf.mxu0 }
 0x2aa   : > { %2276 = vst.msk [vmem:[%s4020_s11 + $0x60] sm:$0xff] %vm1702_vm3, %v2165_v16  ;;  %v2319_v53 = vsel %vm1702_vm3, %v2165_v16, 0.0  ;;  %v2379_v0 = vmul.f32 %v2165_v16, %v2165_v16  ;;  %v2424_v36 = vsel %vm1702_vm3, %v2380_v40, 0.0 }
 0x2ab   : > { %v2320_v23 = vadd.f32 %v2319_v53, %v2318_v8 }
 0x2ac   : > { %v2422_v38 = vsel %vm1702_vm3, %v2379_v0, 0.0 }
 0x2ad   : > { %v2423_v15 = vadd.f32 %v2422_v38, %v2421_v45  ;;  %v2322_v2 = vadd.f32 %v2321_v42, %v2320_v23 }
 0x2af   : > { %v2425_v43 = vadd.f32 %v2424_v36, %v2423_v15 }
 0x2bb   : > { %v2693_v49 = vpop.f32.mrf.mxu0 }
 0x2bc   : > { %2279 = vst.msk [vmem:[%s4020_s11 + $0x78] sm:$0xff] %vm1702_vm3, %v2693_v49  ;;  %v2382_v14 = vmul.f32 %v2693_v49, %v2693_v49  ;;  %v2325_v51 = vsel %vm1702_vm3, %v2693_v49, 0.0 }
 0x2bd   : > { %v2175_v25 = vpop.f32.mrf.mxu0 }
 0x2be   : > { %2278 = vst.msk [vmem:[%s4020_s11 + $0x70] sm:$0xff] %vm1702_vm3, %v2175_v25  ;;  %v2323_v24 = vsel %vm1702_vm3, %v2175_v25, 0.0  ;;  %v2381_v61 = vmul.f32 %v2175_v25, %v2175_v25  ;;  %v2428_v17 = vsel %vm1702_vm3, %v2382_v14, 0.0 }
 0x2bf   : > { %v2324_v26 = vadd.f32 %v2323_v24, %v2322_v2 }
 0x2c0   : > { %v2426_v29 = vsel %vm1702_vm3, %v2381_v61, 0.0 }
 0x2c1   : > { %v2326_v59 = vadd.f32 %v2325_v51, %v2324_v26  ;;  %v2427_v52 = vadd.f32 %v2426_v29, %v2425_v43 }
 0x2c3   : > { %v2429_v54 = vadd.f32 %v2428_v17, %v2427_v52 }
 0x2cf   : > { %v2696_v11 = vpop.f32.mrf.mxu1 }
 0x2d0   : > { %2281 = vst.msk [vmem:[%s4020_s11 + $0x88] sm:$0xff] %vm1702_vm3, %v2696_v11  ;;  %v2384_v32 = vmul.f32 %v2696_v11, %v2696_v11  ;;  %v2329_v4 = vsel %vm1702_vm3, %v2696_v11, 0.0 }
 0x2d1   : > { %v2185_v21 = vpop.f32.mrf.mxu1 }
 0x2d2   : > { %2280 = vst.msk [vmem:[%s4020_s11 + $0x80] sm:$0xff] %vm1702_vm3, %v2185_v21  ;;  %v2327_v18 = vsel %vm1702_vm3, %v2185_v21, 0.0  ;;  %v2383_v5 = vmul.f32 %v2185_v21, %v2185_v21  ;;  %v2432_v47 = vsel %vm1702_vm3, %v2384_v32, 0.0 }
 0x2d3   : > { %v2328_v13 = vadd.f32 %v2327_v18, %v2326_v59 }
 0x2d4   : > { %v2430_v46 = vsel %vm1702_vm3, %v2383_v5, 0.0 }
 0x2d5   : > { %v2431_v62 = vadd.f32 %v2430_v46, %v2429_v54  ;;  %v2330_v19 = vadd.f32 %v2329_v4, %v2328_v13 }
 0x2d7   : > { %v2433_v55 = vadd.f32 %v2432_v47, %v2431_v62 }
 0x2e3   : > { %v2699_v28 = vpop.f32.mrf.mxu1 }
 0x2e4   : > { %2283 = vst.msk [vmem:[%s4020_s11 + $0x98] sm:$0xff] %vm1702_vm3, %v2699_v28  ;;  %v2386_v60 = vmul.f32 %v2699_v28, %v2699_v28  ;;  %v2333_v48 = vsel %vm1702_vm3, %v2699_v28, 0.0 }
 0x2e5   : > { %v2195_v50 = vpop.f32.mrf.mxu1 }
 0x2e6   : > { %2282 = vst.msk [vmem:[%s4020_s11 + $0x90] sm:$0xff] %vm1702_vm3, %v2195_v50  ;;  %v2331_v20 = vsel %vm1702_vm3, %v2195_v50, 0.0  ;;  %v2385_v8 = vmul.f32 %v2195_v50, %v2195_v50  ;;  %v2436_v27 = vsel %vm1702_vm3, %v2386_v60, 0.0 }
 0x2e7   : > { %v2332_v1 = vadd.f32 %v2331_v20, %v2330_v19 }
 0x2e8   : > { %v2434_v22 = vsel %vm1702_vm3, %v2385_v8, 0.0 }
 0x2e9   : > { %v2435_v57 = vadd.f32 %v2434_v22, %v2433_v55  ;;  %v2334_v45 = vadd.f32 %v2333_v48, %v2332_v1 }
 0x2eb   : > { %v2437_v34 = vadd.f32 %v2436_v27, %v2435_v57 }
 0x2f4   : > { %v2702_v6 = vpop.f32.mrf.mxu1 }
 0x2f5   : > { %2285 = vst.msk [vmem:[%s4020_s11 + $0xa8] sm:$0xff] %vm1702_vm3, %v2702_v6  ;;  %v2388_v35 = vmul.f32 %v2702_v6, %v2702_v6  ;;  %v2337_v3 = vsel %vm1702_vm3, %v2702_v6, 0.0 }
 0x2f6   : > { %v2205_v12 = vpop.f32.mrf.mxu1 }
 0x2f7   : > { %2284 = vst.msk [vmem:[%s4020_s11 + $0xa0] sm:$0xff] %vm1702_vm3, %v2205_v12  ;;  %v2335_v37 = vsel %vm1702_vm3, %v2205_v12, 0.0  ;;  %v2387_v58 = vmul.f32 %v2205_v12, %v2205_v12  ;;  %v2440_v10 = vsel %vm1702_vm3, %v2388_v35, 0.0 }
 0x2f8   : > { %v2336_v33 = vadd.f32 %v2335_v37, %v2334_v45 }
 0x2f9   : > { %v2438_v41 = vsel %vm1702_vm3, %v2387_v58, 0.0 }
 0x2fa   : > { %v2439_v31 = vadd.f32 %v2438_v41, %v2437_v34  ;;  %v2338_v30 = vadd.f32 %v2337_v3, %v2336_v33 }
 0x2fc   : > { %v2441_v63 = vadd.f32 %v2440_v10, %v2439_v31 }
 0x30c   : > { %v2705_v7 = vpop.f32.mrf.mxu1 }
 0x30d   : > { %2287 = vst.msk [vmem:[%s4020_s11 + $0xb8] sm:$0xff] %vm1702_vm3, %v2705_v7  ;;  %v2390_v9 = vmul.f32 %v2705_v7, %v2705_v7  ;;  %v2341_v40 = vsel %vm1702_vm3, %v2705_v7, 0.0 }
 0x30e   : > { %v2215_v44 = vpop.f32.mrf.mxu1 }
 0x30f   : > { %2286 = vst.msk [vmem:[%s4020_s11 + $0xb0] sm:$0xff] %vm1702_vm3, %v2215_v44  ;;  %v2339_v56 = vsel %vm1702_vm3, %v2215_v44, 0.0  ;;  %v2389_v39 = vmul.f32 %v2215_v44, %v2215_v44  ;;  %v2444_v42 = vsel %vm1702_vm3, %v2390_v9, 0.0 }
 0x310   : > { %v2340_v16 = vadd.f32 %v2339_v56, %v2338_v30 }
 0x311   : > { %v2442_v53 = vsel %vm1702_vm3, %v2389_v39, 0.0 }
 0x312   : > { %v2443_v0 = vadd.f32 %v2442_v53, %v2441_v63  ;;  %v2342_v23 = vadd.f32 %v2341_v40, %v2340_v16 }
 0x314   : > { %v2445_v38 = vadd.f32 %v2444_v42, %v2443_v0 }
 0x324   : > { %v2708_v15 = vpop.f32.mrf.mxu1 }
 0x325   : > { %2289 = vst.msk [vmem:[%s4020_s11 + $0xc8] sm:$0xff] %vm1702_vm3, %v2708_v15  ;;  %v2392_v51 = vmul.f32 %v2708_v15, %v2708_v15  ;;  %v2345_v52 = vsel %vm1702_vm3, %v2708_v15, 0.0 }
 0x326   : > { %v2225_v2 = vpop.f32.mrf.mxu1 }
 0x327   : > { %2288 = vst.msk [vmem:[%s4020_s11 + $0xc0] sm:$0xff] %vm1702_vm3, %v2225_v2  ;;  %v2391_v49 = vmul.f32 %v2225_v2, %v2225_v2  ;;  %v2343_v14 = vsel %vm1702_vm3, %v2225_v2, 0.0  ;;  %v2448_v11 = vsel %vm1702_vm3, %v2392_v51, 0.0 }
 0x328   : > { %v2344_v26 = vadd.f32 %v2343_v14, %v2342_v23 }
 0x329   : > { %v2446_v61 = vsel %vm1702_vm3, %v2391_v49, 0.0 }
 0x32a   : > { %v2447_v59 = vadd.f32 %v2446_v61, %v2445_v38  ;;  %v2346_v54 = vadd.f32 %v2345_v52, %v2344_v26 }
 0x32c   : > { %v2449_v18 = vadd.f32 %v2448_v11, %v2447_v59 }
 0x33c   : > { %v2711_v36 = vpop.f32.mrf.mxu1 }
 0x33d   : > { %2291 = vst.msk [vmem:[%s4020_s11 + $0xd8] sm:$0xff] %vm1702_vm3, %v2711_v36  ;;  %v2394_v5 = vmul.f32 %v2711_v36, %v2711_v36  ;;  %v2349_v46 = vsel %vm1702_vm3, %v2711_v36, 0.0 }
 0x33e   : > { %v2235_v43 = vpop.f32.mrf.mxu1 }
 0x33f   : > { %2290 = vst.msk [vmem:[%s4020_s11 + $0xd0] sm:$0xff] %vm1702_vm3, %v2235_v43  ;;  %v2393_v29 = vmul.f32 %v2235_v43, %v2235_v43  ;;  %v2347_v17 = vsel %vm1702_vm3, %v2235_v43, 0.0  ;;  %v2452_v47 = vsel %vm1702_vm3, %v2394_v5, 0.0 }
 0x340   : > { %v2348_v32 = vadd.f32 %v2347_v17, %v2346_v54 }
 0x341   : > { %v2450_v21 = vsel %vm1702_vm3, %v2393_v29, 0.0 }
 0x342   : > { %v2451_v4 = vadd.f32 %v2450_v21, %v2449_v18  ;;  %v2350_v19 = vadd.f32 %v2349_v46, %v2348_v32 }
 0x344   : > { %v2453_v50 = vadd.f32 %v2452_v47, %v2451_v4 }
 0x354   : > { %v2714_v25 = vpop.f32.mrf.mxu1 }
 0x355   : > { %2293 = vst.msk [vmem:[%s4020_s11 + $0xe8] sm:$0xff] %vm1702_vm3, %v2714_v25  ;;  %v2396_v60 = vmul.f32 %v2714_v25, %v2714_v25  ;;  %v2353_v1 = vsel %vm1702_vm3, %v2714_v25, 0.0 }
 0x356   : > { %v2245_v24 = vpop.f32.mrf.mxu1 }
 0x357   : > { %2292 = vst.msk [vmem:[%s4020_s11 + $0xe0] sm:$0xff] %vm1702_vm3, %v2245_v24  ;;  %v2395_v13 = vmul.f32 %v2245_v24, %v2245_v24  ;;  %v2351_v62 = vsel %vm1702_vm3, %v2245_v24, 0.0  ;;  %v2456_v57 = vsel %vm1702_vm3, %v2396_v60, 0.0 }
 0x358   : > { %v2352_v28 = vadd.f32 %v2351_v62, %v2350_v19 }
 0x359   : > { %v2454_v55 = vsel %vm1702_vm3, %v2395_v13, 0.0 }
 0x35a   : > { %v2455_v20 = vadd.f32 %v2454_v55, %v2453_v50  ;;  %v2354_v22 = vadd.f32 %v2353_v1, %v2352_v28 }
 0x35c   : > { %v2457_v12 = vadd.f32 %v2456_v57, %v2455_v20 }
 0x367   : > { %v2717_v8 = vpop.f32.mrf.mxu1 }
 0x368   : > { %2295 = vst.msk [vmem:[%s4020_s11 + $0xf8] sm:$0xff] %vm1702_vm3, %v2717_v8  ;;  %v2398_v45 = vmul.f32 %v2717_v8, %v2717_v8  ;;  %v2357_v35 = vsel %vm1702_vm3, %v2717_v8, 0.0 }
 0x369   : > { %v2255_v48 = vpop.f32.mrf.mxu1 }
 0x36a   : > { %2294 = vst.msk [vmem:[%s4020_s11 + $0xf0] sm:$0xff] %vm1702_vm3, %v2255_v48  ;;  %v2355_v27 = vsel %vm1702_vm3, %v2255_v48, 0.0  ;;  %v2397_v34 = vmul.f32 %v2255_v48, %v2255_v48  ;;  %v2460_v3 = vsel %vm1702_vm3, %v2398_v45, 0.0 }
 0x36b   : > { %v2356_v6 = vadd.f32 %v2355_v27, %v2354_v22 }
 0x36c   : > { %v2458_v37 = vsel %vm1702_vm3, %v2397_v34, 0.0 }
 0x36d   : > { %v2358_v58 = vadd.f32 %v2357_v35, %v2356_v6  ;;  %v2459_v33 = vadd.f32 %v2458_v37, %v2457_v12 }
 0x36f   : > { %v2359_v41 = vrot.slane %v2358_v58, 4  ;;  %v2461_v31 = vadd.f32 %v2460_v3, %v2459_v33 }
 0x371   : > { %v2360_v30 = vadd.f32 %v2359_v41, %v2358_v58  ;;  %v2462_v10 = vrot.slane %v2461_v31, 4 }
 0x373   : > { %v2361_v63 = vrot.slane %v2360_v30, 2  ;;  %v2463_v7 = vadd.f32 %v2462_v10, %v2461_v31 }
 0x375   : > { %v2362_v44 = vadd.f32 %v2361_v63, %v2360_v30  ;;  %v2464_v9 = vrot.slane %v2463_v7, 2 }
 0x377   : > { %v2363_v56 = vrot.slane %v2362_v44, 1  ;;  %v2465_v39 = vadd.f32 %v2464_v9, %v2463_v7 }
 0x379   : > { %v2364_v16 = vadd.f32 %v2363_v56, %v2362_v44  ;;  %v2466_v40 = vrot.slane %v2465_v39, 1 }
 0x37b   : > { %2366 = vst.msk [vmem:[%s225_s14] sm:$0x1] %vm2365_vm11, %v2364_v16  ;;  %v2467_v53 = vadd.f32 %v2466_v40, %v2465_v39 }
 0x37d   : > { %2468 = vst.msk [vmem:[%s225_s14 + $0x1] sm:$0x1] %vm2365_vm11, %v2467_v53 }
 0x37e   : > { %2798 = shalt.err (!%p2795_p3)
}
 0x37f   : > { %s2799_s8 = scalar_lea.hbm %s2489_s21, 32  ;;  %s2803_s7 = scalar_lea.hbm %s4331_s5, 64 }
 0x380   : > { %p2800_p4 = scmp.ne.s32.totalorder %s2489_s21, %s2799_s8  ;;  %p2804_p9 = scmp.lt.s32.totalorder %s2489_s21, %s4331_s5 }
 0x381   : > { %p2805_p10 = scmp.lt.s32.totalorder %s2803_s7, %s2799_s8 }
 0x382   : > { %p2801_p7 = pnand %p2800_p4, %p2925_p5 }
 0x383   : > { %p2806_p11 = por %p2805_p10, %p2804_p9 }
 0x384   : > { %p2802_p8 = pneg %p2801_p7 }
 0x386   : > { %p2807_p12 = pnand %p2806_p11, %p2802_p8 }
 0x388   : > { %2810 = shalt.err (!%p2807_p12)
}
 0x389   : > { %2728 = dma.vmem_to_hbm [thread:$0]  (%p2925_p5), %s2492_s15, 32, %s2489_s21, %s2475_s23  }
 0x38a PF: > { %p2734_p13 = scmp.ge.s32.totalorder %s2845_s1, 2  ;;  %s2511_s28 = sand.u32 1, %s2833_s18  }
 0x38b   : > { %s2512_s29 = scalar_lea.sflag [#allocation4], %s2511_s28 }
 0x38c   : > { %p2731_p0 = pnand %p2734_p13, %p2929_p6 }
 0x38e   : > { %p2732_p1 = pneg %p2731_p0 }
 0x390   : > { %2828 = dma.done.wait (%p2732_p1), %s2512_s29, 32  }
 0x391   : > { %2830 = vsyncadd (%p2732_p1), %s2512_s29, 4294967264  ;;  %p16_p2 = scmp.ge.s32.totalorder %s2912_s22, 4   ;;  %s4463_s18 = smov %s2837_s19 }
 0x392   : > { %s4464_s19 = smov %s2841_s20  ;;  %s4465_s20 = smov %s2923_s25 }
 0x393   : > { %s4466_s1 = smov %s2912_s22  ;;  %18 = sbr.rel (!%p16_p2) target bundleno = 3 (0x3), region = 85 }
 0x398   :  { %2517 = vsyncpa [#allocation4], 1 }
 0x399   :  { %2519 = vsyncpa [#allocation4 + $0x1], 1 }

</bundles_post_ra>
